<compile_context>
chip_gen: v7x
topology: tpu7x:2x2x1
jax: 0.10.0
libtpu: 0.0.40
codegen_flags: <defaults>
</compile_context>

<pallas_src>
import math
from functools import partial

import jax
import jax.numpy as jnp
from jax.experimental import pallas as pl
from jax.experimental.pallas import tpu as pltpu


def _layernorm(x, g, b, eps=1e-5):
    mu = jnp.mean(x, axis=-1, keepdims=True)
    var = jnp.mean(jnp.square(x - mu), axis=-1, keepdims=True)
    return (x - mu) * jax.lax.rsqrt(var + eps) * g + b


def encoder_stack_kernel(num_heads, num_layers, emb_scale,
                         x_ref, pe_ref,
                         wq_ref, wk_ref, wv_ref, wo_ref,
                         w1_ref, b1_ref, w2_ref, lnp_ref,
                         o_ref, x_scr):
    """One (batch-block, layer) grid step of the encoder stack.

    Grid = (B/block_b, L).  The f32 activation lives in x_scr across the
    layer axis; only the current layer's weights are resident in VMEM.
    """
    l = pl.program_id(1)
    Bb, S, D = x_ref.shape
    M = Bb * S
    H = num_heads
    hd = D // H
    scale = 1.0 / math.sqrt(hd)

    # ---- layer 0: fused embedding scale + positional encoding -------------
    @pl.when(l == 0)
    def _():
        x_scr[...] = x_ref[...] * emb_scale + pe_ref[...]   # dropout == identity

    x = x_scr[...].reshape(M, D)                 # f32 activation carry
    xb = x.astype(jnp.bfloat16)

    lnp = lnp_ref[...]                           # (9, D) f32 bias / LN slab
    bq, bk, bv, bo = lnp[0:1], lnp[1:2], lnp[2:3], lnp[3:4]
    g1, be1 = lnp[4:5], lnp[5:6]
    b2, g2, be2 = lnp[6:7], lnp[7:8], lnp[8:9]

    # ---- multi-head self-attention -----------------------------------------
    q = jnp.dot(xb, wq_ref[...], preferred_element_type=jnp.float32) + bq
    k = jnp.dot(xb, wk_ref[...], preferred_element_type=jnp.float32) + bk
    v = jnp.dot(xb, wv_ref[...], preferred_element_type=jnp.float32) + bv
    q = q * scale                                # fold 1/sqrt(hd) into Q once

    # Collapse (batch-block, head) into a single leading batch dim so the two
    # attention dots are single batched matmuls.
    # TODO(synk): the (0,2,1,3) transposes are XLU relayouts; for large shapes
    # express them with pltpu.einshape / dot_general batch dims instead.
    def heads(t):
        return jnp.transpose(t.reshape(Bb, S, H, hd), (0, 2, 1, 3)) \
                  .reshape(Bb * H, S, hd).astype(jnp.bfloat16)

    qh, kh, vh = heads(q), heads(k), heads(v)

    # TODO(synk): mask=None path only; for large S tile KV with an online
    # (flash-style) softmax instead of materializing (Bb*H, S, S) f32 scores.
    s = jnp.einsum('gqd,gkd->gqk', qh, kh, preferred_element_type=jnp.float32)
    s = s - jnp.max(s, axis=-1, keepdims=True)
    p = jnp.exp(s)
    p = p * pl.reciprocal(jnp.sum(p, axis=-1, keepdims=True), approx=True)

    ctx = jnp.einsum('gqk,gkd->gqd', p.astype(jnp.bfloat16), vh,
                     preferred_element_type=jnp.float32)      # (Bb*H, S, hd)
    ctx = jnp.transpose(ctx.reshape(Bb, H, S, hd), (0, 2, 1, 3)).reshape(M, D)

    attn = jnp.dot(ctx.astype(jnp.bfloat16), wo_ref[...],
                   preferred_element_type=jnp.float32) + bo

    # residual + LayerNorm 1 (dropout == identity)
    out1 = _layernorm(x + attn, g1, be1)

    # ---- feed-forward -------------------------------------------------------
    h1 = jnp.dot(out1.astype(jnp.bfloat16), w1_ref[...],
                 preferred_element_type=jnp.float32) + b1_ref[...]
    h1 = jnp.maximum(h1, 0.0)                                 # ReLU
    ff = jnp.dot(h1.astype(jnp.bfloat16), w2_ref[...],
                 preferred_element_type=jnp.float32) + b2

    # residual + LayerNorm 2 -> carry to next layer step
    x_scr[...] = _layernorm(out1 + ff, g2, be2).reshape(Bb, S, D)

    @pl.when(l == num_layers - 1)
    def _():
        o_ref[...] = x_scr[...].astype(o_ref.dtype)


# --------------------------- wrapper / plumbing ------------------------------
def prepare_encoder_params(layer_params):
    """Stack + cast per-layer parameters ONCE (hoisted out of the forward).

    Weights -> bf16 (halves weight DMA / VMEM); biases & LN params stay f32
    and are packed into a single (L, 9, D) slab (+ (L, 1, F) for b1).
    """
    def stack(name, dtype):
        return jnp.stack([p[name] for p in layer_params]).astype(dtype)

    lnp = jnp.stack([
        jnp.concatenate([p["bq"], p["bk"], p["bv"], p["bo"],
                         p["g1"], p["be1"], p["b2"], p["g2"], p["be2"]], axis=0)
        for p in layer_params
    ]).astype(jnp.float32)                                      # (L, 9, D)

    return {
        "wq": stack("wq", jnp.bfloat16), "wk": stack("wk", jnp.bfloat16),
        "wv": stack("wv", jnp.bfloat16), "wo": stack("wo", jnp.bfloat16),
        "w1": stack("w1", jnp.bfloat16), "w2": stack("w2", jnp.bfloat16),
        "b1": stack("b1", jnp.float32),                          # (L, 1, F)
        "lnp": lnp,
    }
    # TODO(synk): on v7x, w1/w2 could additionally be stored fp8 (MXU-native).


def _pick_block_b(B, S):
    """Largest divisor of B with block_b*S <= 1024 (feeds the MXU M dim)."""
    best = 1
    for c in range(1, B + 1):
        if B % c == 0 and c * S <= 1024:
            best = c
    return best


def _vmem_limit_bytes(D, F, S, H, block_b):
    """Derive the VMEM budget from actual resident block bytes, capped by HW."""
    bf16, f32 = 2, 4
    w_layer = (4 * D * D + 2 * D * F) * bf16 + (9 * D + F) * f32   # one layer
    act = block_b * S * D * f32
    scores = block_b * H * S * S * f32
    need = (2 * w_layer          # double-buffered per-layer weights
            + 5 * act            # emb in (x2), out (x2), activation scratch
            + S * D * f32        # single-buffered PE
            + 2 * scores         # scores + probs temporaries
            + 6 * act)           # q/k/v/ctx/ffn temporaries
    need = int(need * 1.25) + (4 << 20)
    try:
        cap = int(pltpu.get_tpu_info().vmem_capacity_bytes)
    except Exception:
        cap = 64 * 1024 * 1024   # v7x worst case
    return int(max(min(need, int(cap * 0.85)), 16 << 20))


@partial(jax.jit, static_argnames=("num_heads",))
def transformer_encoder_forward(tokens, emb_table, pe, params, num_heads):
    """tokens: (B, S) int32 -> (B, S, D) f32.  One pallas_call, grid=(B/blk, L)."""
    B, S = tokens.shape
    D = emb_table.shape[1]
    L, _, F = params["b1"].shape
    H = num_heads

    emb = emb_table[tokens]                      # data-dependent gather in JAX
    pe_s = pe[:S]                                # (S, D) f32

    block_b = _pick_block_b(B, S)
    grid = (B // block_b, L)

    def layer_spec(d1, d2):
        return pl.BlockSpec((pl.Squeezed(), d1, d2), lambda b, l: (l, 0, 0))

    in_specs = [
        # embeddings: constant over l -> DMA'd once per batch block
        pl.BlockSpec((block_b, S, D), lambda b, l: (b, 0, 0)),
        # positional encoding: block index never changes -> single buffer
        pl.BlockSpec((S, D), lambda b, l: (0, 0),
                     pipeline_mode=pl.Buffered(1)),
        layer_spec(D, D),      # wq
        layer_spec(D, D),      # wk
        layer_spec(D, D),      # wv
        layer_spec(D, D),      # wo
        layer_spec(D, F),      # w1
        layer_spec(1, F),      # b1
        layer_spec(F, D),      # w2
        layer_spec(9, D),      # bias / LN slab
    ]
    # constant index over l -> output block resident across the layer axis
    out_spec = pl.BlockSpec((block_b, S, D), lambda b, l: (b, 0, 0))

    kernel = partial(encoder_stack_kernel, H, L, math.sqrt(D))

    return pl.pallas_call(
        kernel,
        out_shape=jax.ShapeDtypeStruct((B, S, D), jnp.float32),
        grid=grid,
        in_specs=in_specs,
        out_specs=out_spec,
        scratch_shapes=[pltpu.VMEM((block_b, S, D), jnp.float32)],
        compiler_params=pltpu.CompilerParams(
            dimension_semantics=("parallel", "arbitrary"),
            vmem_limit_bytes=_vmem_limit_bytes(D, F, S, H, block_b)),
    )(emb, pe_s, params["wq"], params["wk"], params["wv"], params["wo"],
      params["w1"], params["b1"], params["w2"], params["lnp"])


# ---------------- plain-JAX glue: positional encoding table -----------------
def sinusoidal_pe(max_len, d_model):
    pos = jnp.arange(max_len, dtype=jnp.float32)[:, None]
    i = jnp.arange(0, d_model, 2, dtype=jnp.float32)[None, :]
    angles = pos / jnp.power(10000.0, i / d_model)
    pe = jnp.zeros((max_len, d_model), jnp.float32)
    pe = pe.at[:, 0::2].set(jnp.sin(angles))
    pe = pe.at[:, 1::2].set(jnp.cos(angles))
    return pe


# ---------------- deterministic parameter init ------------------------------
def init_layer_params(key, D, F):
    ks = jax.random.split(key, 6)
    s = 0.02
    return {
        "wq": s * jax.random.normal(ks[0], (D, D), jnp.float32),
        "bq": jnp.zeros((1, D), jnp.float32),
        "wk": s * jax.random.normal(ks[1], (D, D), jnp.float32),
        "bk": jnp.zeros((1, D), jnp.float32),
        "wv": s * jax.random.normal(ks[2], (D, D), jnp.float32),
        "bv": jnp.zeros((1, D), jnp.float32),
        "wo": s * jax.random.normal(ks[3], (D, D), jnp.float32),
        "bo": jnp.zeros((1, D), jnp.float32),
        "g1": jnp.ones((1, D), jnp.float32),
        "be1": jnp.zeros((1, D), jnp.float32),
        "w1": s * jax.random.normal(ks[4], (D, F), jnp.float32),
        "b1": jnp.zeros((1, F), jnp.float32),
        "w2": s * jax.random.normal(ks[5], (F, D), jnp.float32),
        "b2": jnp.zeros((1, D), jnp.float32),
        "g2": jnp.ones((1, D), jnp.float32),
        "be2": jnp.zeros((1, D), jnp.float32),
    }


if __name__ == "__main__":
    vocab_size = 50
    embedding_dim = 32       # NOTE: non-toy configs should use multiples of 128
    num_layers = 2
    num_heads = 8            # NOTE: head_dim >= 128 preferred on real configs
    ff_dim = 64
    max_seq_length = 100
    B, S = 2, 8

    key = jax.random.PRNGKey(0)
    k_tok, k_emb, *k_layers = jax.random.split(key, 2 + num_layers)

    tokens = jax.random.randint(k_tok, (B, S), 0, vocab_size, dtype=jnp.int32)
    emb_table = 0.02 * jax.random.normal(k_emb, (vocab_size, embedding_dim),
                                         jnp.float32)
    pe = sinusoidal_pe(max_seq_length, embedding_dim)
    layer_params = [init_layer_params(k, embedding_dim, ff_dim)
                    for k in k_layers]

    # stack / cast once, outside the forward (hoisted per perf review)
    params = prepare_encoder_params(layer_params)

    out = transformer_encoder_forward(tokens, emb_table, pe, params,
                                      num_heads=num_heads)
    out = jax.block_until_ready(out)
    assert out.shape == (B, S, embedding_dim)
    assert bool(jnp.all(jnp.isfinite(out)))
    print("KERNEL_OK")
</pallas_src>

<mosaic_0001>
module attributes {stable_mosaic.version = 11 : i64} {
  func.func @encoder_stack_kernel(%arg0: i32, %arg1: i32, %arg2: memref<2x8x32xf32, #tpu.memory_space<vmem>>, %arg3: memref<8x32xf32, #tpu.memory_space<vmem>>, %arg4: memref<1x32x32xbf16, #tpu.memory_space<vmem>>, %arg5: memref<1x32x32xbf16, #tpu.memory_space<vmem>>, %arg6: memref<1x32x32xbf16, #tpu.memory_space<vmem>>, %arg7: memref<1x32x32xbf16, #tpu.memory_space<vmem>>, %arg8: memref<1x32x64xbf16, #tpu.memory_space<vmem>>, %arg9: memref<1x1x64xf32, #tpu.memory_space<vmem>>, %arg10: memref<1x64x32xbf16, #tpu.memory_space<vmem>>, %arg11: memref<1x9x32xf32, #tpu.memory_space<vmem>>, %arg12: memref<2x8x32xf32, #tpu.memory_space<vmem>>, %arg13: memref<2x8x32xf32, #tpu.memory_space<vmem>>) attributes {dimension_semantics = [#tpu.dimension_semantics<parallel>, #tpu.dimension_semantics<arbitrary>], iteration_bounds = array<i64: 1, 2>, scalar_prefetch = 0 : i64, scratch_operands = 1 : i64, tpu.core_type = #tpu.core_type<tc>, window_params = [{transform_indices = @transform_0, window_bounds = array<i64: 2, 8, 32>}, {pipeline_mode = #tpu.pipeline_mode<synchronous>, transform_indices = @transform_1, window_bounds = array<i64: 8, 32>}, {transform_indices = @transform_2, window_bounds = array<i64: 1, 32, 32>}, {transform_indices = @transform_3, window_bounds = array<i64: 1, 32, 32>}, {transform_indices = @transform_4, window_bounds = array<i64: 1, 32, 32>}, {transform_indices = @transform_5, window_bounds = array<i64: 1, 32, 32>}, {transform_indices = @transform_6, window_bounds = array<i64: 1, 32, 64>}, {transform_indices = @transform_7, window_bounds = array<i64: 1, 1, 64>}, {transform_indices = @transform_8, window_bounds = array<i64: 1, 64, 32>}, {transform_indices = @transform_9, window_bounds = array<i64: 1, 9, 32>}, {transform_indices = @transform_10, window_bounds = array<i64: 2, 8, 32>}]} {
    %c0_i32 = arith.constant 0 : i32
    %0 = arith.cmpi eq, %arg1, %c0_i32 : i32
    %1 = arith.extui %0 : i1 to i32
    %c0_i32_0 = arith.constant 0 : i32
    %2 = arith.cmpi ne, %1, %c0_i32_0 : i32
    scf.if %2 {
      %c0_52 = arith.constant 0 : index
      %c0_53 = arith.constant 0 : index
      %c0_54 = arith.constant 0 : index
      %135 = vector.load %arg2[%c0_52, %c0_53, %c0_54] : memref<2x8x32xf32, #tpu.memory_space<vmem>>, vector<2x8x32xf32>
      %cst_55 = arith.constant 5.65685415 : f32
      %136 = vector.broadcast %cst_55 : f32 to vector<2x8x32xf32>
      %137 = arith.mulf %135, %136 : vector<2x8x32xf32>
      %c0_56 = arith.constant 0 : index
      %c0_57 = arith.constant 0 : index
      %138 = vector.load %arg3[%c0_56, %c0_57] : memref<8x32xf32, #tpu.memory_space<vmem>>, vector<8x32xf32>
      %139 = vector.shape_cast %138 : vector<8x32xf32> to vector<1x8x32xf32>
      %140 = vector.broadcast %139 : vector<1x8x32xf32> to vector<2x8x32xf32>
      %141 = arith.addf %137, %140 : vector<2x8x32xf32>
      %c0_58 = arith.constant 0 : index
      %c0_59 = arith.constant 0 : index
      %c0_60 = arith.constant 0 : index
      %142 = vector.load %arg13[%c0_58, %c0_59, %c0_60] : memref<2x8x32xf32, #tpu.memory_space<vmem>>, vector<2x8x32xf32>
      tpu.vector_store %arg13[%c0_58, %c0_59, %c0_60], %141 {strides = array<i32>} : memref<2x8x32xf32, #tpu.memory_space<vmem>>, vector<2x8x32xf32>,
    } else {
    }
    %c0 = arith.constant 0 : index
    %c0_1 = arith.constant 0 : index
    %c0_2 = arith.constant 0 : index
    %3 = vector.load %arg13[%c0, %c0_1, %c0_2] : memref<2x8x32xf32, #tpu.memory_space<vmem>>, vector<2x8x32xf32>
    %4 = vector.shape_cast %3 : vector<2x8x32xf32> to vector<16x32xf32>
    %5 = arith.truncf %4 : vector<16x32xf32> to vector<16x32xbf16>
    %c0_3 = arith.constant 0 : index
    %c0_4 = arith.constant 0 : index
    %c0_5 = arith.constant 0 : index
    %6 = vector.load %arg11[%c0_3, %c0_4, %c0_5] : memref<1x9x32xf32, #tpu.memory_space<vmem>>, vector<1x9x32xf32>
    %7 = vector.shape_cast %6 : vector<1x9x32xf32> to vector<9x32xf32>
    %8 = vector.extract_strided_slice %7 {offsets = [0, 0], sizes = [1, 32], strides = [1, 1]} : vector<9x32xf32> to vector<1x32xf32>
    %9 = vector.extract_strided_slice %7 {offsets = [1, 0], sizes = [1, 32], strides = [1, 1]} : vector<9x32xf32> to vector<1x32xf32>
    %10 = vector.extract_strided_slice %7 {offsets = [2, 0], sizes = [1, 32], strides = [1, 1]} : vector<9x32xf32> to vector<1x32xf32>
    %11 = vector.extract_strided_slice %7 {offsets = [3, 0], sizes = [1, 32], strides = [1, 1]} : vector<9x32xf32> to vector<1x32xf32>
    %12 = vector.extract_strided_slice %7 {offsets = [4, 0], sizes = [1, 32], strides = [1, 1]} : vector<9x32xf32> to vector<1x32xf32>
    %13 = vector.extract_strided_slice %7 {offsets = [5, 0], sizes = [1, 32], strides = [1, 1]} : vector<9x32xf32> to vector<1x32xf32>
    %14 = vector.extract_strided_slice %7 {offsets = [6, 0], sizes = [1, 32], strides = [1, 1]} : vector<9x32xf32> to vector<1x32xf32>
    %15 = vector.extract_strided_slice %7 {offsets = [7, 0], sizes = [1, 32], strides = [1, 1]} : vector<9x32xf32> to vector<1x32xf32>
    %16 = vector.extract_strided_slice %7 {offsets = [8, 0], sizes = [1, 32], strides = [1, 1]} : vector<9x32xf32> to vector<1x32xf32>
    %c0_6 = arith.constant 0 : index
    %c0_7 = arith.constant 0 : index
    %c0_8 = arith.constant 0 : index
    %17 = vector.load %arg4[%c0_6, %c0_7, %c0_8] : memref<1x32x32xbf16, #tpu.memory_space<vmem>>, vector<1x32x32xbf16>
    %18 = vector.shape_cast %17 : vector<1x32x32xbf16> to vector<32x32xbf16>
    %cst = arith.constant dense<0.000000e+00> : vector<16x32xf32>
    %19 = tpu.matmul %5, %18, %cst {dimension_numbers = #tpu.dot_dimension_numbers<[1], [0], [0], [1], [0, 0, 1, 1], [], []>} : vector<16x32xbf16>, vector<32x32xbf16>, vector<16x32xf32> -> vector<16x32xf32>
    %20 = vector.broadcast %8 : vector<1x32xf32> to vector<16x32xf32>
    %21 = arith.addf %19, %20 : vector<16x32xf32>
    %c0_9 = arith.constant 0 : index
    %c0_10 = arith.constant 0 : index
    %c0_11 = arith.constant 0 : index
    %22 = vector.load %arg5[%c0_9, %c0_10, %c0_11] : memref<1x32x32xbf16, #tpu.memory_space<vmem>>, vector<1x32x32xbf16>
    %23 = vector.shape_cast %22 : vector<1x32x32xbf16> to vector<32x32xbf16>
    %cst_12 = arith.constant dense<0.000000e+00> : vector<16x32xf32>
    %24 = tpu.matmul %5, %23, %cst_12 {dimension_numbers = #tpu.dot_dimension_numbers<[1], [0], [0], [1], [0, 0, 1, 1], [], []>} : vector<16x32xbf16>, vector<32x32xbf16>, vector<16x32xf32> -> vector<16x32xf32>
    %25 = vector.broadcast %9 : vector<1x32xf32> to vector<16x32xf32>
    %26 = arith.addf %24, %25 : vector<16x32xf32>
    %c0_13 = arith.constant 0 : index
    %c0_14 = arith.constant 0 : index
    %c0_15 = arith.constant 0 : index
    %27 = vector.load %arg6[%c0_13, %c0_14, %c0_15] : memref<1x32x32xbf16, #tpu.memory_space<vmem>>, vector<1x32x32xbf16>
    %28 = vector.shape_cast %27 : vector<1x32x32xbf16> to vector<32x32xbf16>
    %cst_16 = arith.constant dense<0.000000e+00> : vector<16x32xf32>
    %29 = tpu.matmul %5, %28, %cst_16 {dimension_numbers = #tpu.dot_dimension_numbers<[1], [0], [0], [1], [0, 0, 1, 1], [], []>} : vector<16x32xbf16>, vector<32x32xbf16>, vector<16x32xf32> -> vector<16x32xf32>
    %30 = vector.broadcast %10 : vector<1x32xf32> to vector<16x32xf32>
    %31 = arith.addf %29, %30 : vector<16x32xf32>
    %cst_17 = arith.constant 5.000000e-01 : f32
    %32 = vector.broadcast %cst_17 : f32 to vector<16x32xf32>
    %33 = arith.mulf %21, %32 : vector<16x32xf32>
    %34 = vector.shape_cast %33 : vector<16x32xf32> to vector<2x8x8x4xf32>
    %35 = tpu.transpose %34, [0, 2, 1, 3] : vector<2x8x8x4xf32> -> vector<2x8x8x4xf32>
    %36 = vector.shape_cast %35 : vector<2x8x8x4xf32> to vector<16x8x4xf32>
    %37 = arith.truncf %36 : vector<16x8x4xf32> to vector<16x8x4xbf16>
    %38 = vector.shape_cast %26 : vector<16x32xf32> to vector<2x8x8x4xf32>
    %39 = tpu.transpose %38, [0, 2, 1, 3] : vector<2x8x8x4xf32> -> vector<2x8x8x4xf32>
    %40 = vector.shape_cast %39 : vector<2x8x8x4xf32> to vector<16x8x4xf32>
    %41 = arith.truncf %40 : vector<16x8x4xf32> to vector<16x8x4xbf16>
    %42 = vector.shape_cast %31 : vector<16x32xf32> to vector<2x8x8x4xf32>
    %43 = tpu.transpose %42, [0, 2, 1, 3] : vector<2x8x8x4xf32> -> vector<2x8x8x4xf32>
    %44 = vector.shape_cast %43 : vector<2x8x8x4xf32> to vector<16x8x4xf32>
    %45 = arith.truncf %44 : vector<16x8x4xf32> to vector<16x8x4xbf16>
    "tpu.trace_start"() <{level = 10 : i32, message = "gqd,gkd->gqk"}> : () -> ()
    %cst_18 = arith.constant dense<0.000000e+00> : vector<16x8x8xf32>
    %46 = tpu.matmul %37, %41, %cst_18 {dimension_numbers = #tpu.dot_dimension_numbers<[2], [2], [1], [1], [0, 0, 0, 1, 1, 1], [0], [0]>} : vector<16x8x4xbf16>, vector<16x8x4xbf16>, vector<16x8x8xf32> -> vector<16x8x8xf32>
    "tpu.trace_stop"() : () -> ()
    %cst_19 = arith.constant dense<0xFF800000> : vector<16x8xf32>
    %47 = vector.multi_reduction <maximumf>, %46, %cst_19 [2] : vector<16x8x8xf32> to vector<16x8xf32>
    %48 = vector.shape_cast %47 : vector<16x8xf32> to vector<16x8x1xf32>
    %49 = vector.broadcast %48 : vector<16x8x1xf32> to vector<16x8x8xf32>
    %50 = arith.subf %46, %49 : vector<16x8x8xf32>
    %51 = math.exp %50 : vector<16x8x8xf32>
    %cst_20 = arith.constant dense<0.000000e+00> : vector<16x8xf32>
    %52 = vector.multi_reduction <add>, %51, %cst_20 [2] : vector<16x8x8xf32> to vector<16x8xf32>
    %53 = vector.shape_cast %52 : vector<16x8xf32> to vector<16x8x1xf32>
    %54 = tpu.reciprocal %53 {approx = true} : vector<16x8x1xf32> -> vector<16x8x1xf32>
    %55 = vector.broadcast %54 : vector<16x8x1xf32> to vector<16x8x8xf32>
    %56 = arith.mulf %51, %55 : vector<16x8x8xf32>
    %57 = arith.truncf %56 : vector<16x8x8xf32> to vector<16x8x8xbf16>
    "tpu.trace_start"() <{level = 10 : i32, message = "gqk,gkd->gqd"}> : () -> ()
    %cst_21 = arith.constant dense<0.000000e+00> : vector<16x8x4xf32>
    %58 = tpu.matmul %57, %45, %cst_21 {dimension_numbers = #tpu.dot_dimension_numbers<[2], [1], [1], [2], [0, 0, 0, 1, 1, 2], [0], [0]>} : vector<16x8x8xbf16>, vector<16x8x4xbf16>, vector<16x8x4xf32> -> vector<16x8x4xf32>
    "tpu.trace_stop"() : () -> ()
    %59 = vector.shape_cast %58 : vector<16x8x4xf32> to vector<2x8x8x4xf32>
    %60 = tpu.transpose %59, [0, 2, 1, 3] : vector<2x8x8x4xf32> -> vector<2x8x8x4xf32>
    %61 = vector.shape_cast %60 : vector<2x8x8x4xf32> to vector<16x32xf32>
    %62 = arith.truncf %61 : vector<16x32xf32> to vector<16x32xbf16>
    %c0_22 = arith.constant 0 : index
    %c0_23 = arith.constant 0 : index
    %c0_24 = arith.constant 0 : index
    %63 = vector.load %arg7[%c0_22, %c0_23, %c0_24] : memref<1x32x32xbf16, #tpu.memory_space<vmem>>, vector<1x32x32xbf16>
    %64 = vector.shape_cast %63 : vector<1x32x32xbf16> to vector<32x32xbf16>
    %cst_25 = arith.constant dense<0.000000e+00> : vector<16x32xf32>
    %65 = tpu.matmul %62, %64, %cst_25 {dimension_numbers = #tpu.dot_dimension_numbers<[1], [0], [0], [1], [0, 0, 1, 1], [], []>} : vector<16x32xbf16>, vector<32x32xbf16>, vector<16x32xf32> -> vector<16x32xf32>
    %66 = vector.broadcast %11 : vector<1x32xf32> to vector<16x32xf32>
    %67 = arith.addf %65, %66 : vector<16x32xf32>
    %68 = arith.addf %4, %67 : vector<16x32xf32>
    %cst_26 = arith.constant dense<0.000000e+00> : vector<16xf32>
    %69 = vector.multi_reduction <add>, %68, %cst_26 [1] : vector<16x32xf32> to vector<16xf32>
    %70 = vector.shape_cast %69 : vector<16xf32> to vector<16x1xf32>
    %cst_27 = arith.constant 3.200000e+01 : f32
    %71 = vector.broadcast %cst_27 : f32 to vector<16x1xf32>
    %72 = arith.divf %70, %71 : vector<16x1xf32>
    %73 = vector.broadcast %72 : vector<16x1xf32> to vector<16x32xf32>
    %74 = arith.subf %68, %73 : vector<16x32xf32>
    %75 = arith.mulf %74, %74 : vector<16x32xf32>
    %cst_28 = arith.constant dense<0.000000e+00> : vector<16xf32>
    %76 = vector.multi_reduction <add>, %75, %cst_28 [1] : vector<16x32xf32> to vector<16xf32>
    %77 = vector.shape_cast %76 : vector<16xf32> to vector<16x1xf32>
    %cst_29 = arith.constant 3.200000e+01 : f32
    %78 = vector.broadcast %cst_29 : f32 to vector<16x1xf32>
    %79 = arith.divf %77, %78 : vector<16x1xf32>
    %80 = vector.broadcast %72 : vector<16x1xf32> to vector<16x32xf32>
    %81 = arith.subf %68, %80 : vector<16x32xf32>
    %cst_30 = arith.constant 9.99999974E-6 : f32
    %82 = vector.broadcast %cst_30 : f32 to vector<16x1xf32>
    %83 = arith.addf %79, %82 : vector<16x1xf32>
    %84 = math.rsqrt %83 : vector<16x1xf32>
    %85 = vector.broadcast %84 : vector<16x1xf32> to vector<16x32xf32>
    %86 = arith.mulf %81, %85 : vector<16x32xf32>
    %87 = vector.broadcast %12 : vector<1x32xf32> to vector<16x32xf32>
    %88 = arith.mulf %86, %87 : vector<16x32xf32>
    %89 = vector.broadcast %13 : vector<1x32xf32> to vector<16x32xf32>
    %90 = arith.addf %88, %89 : vector<16x32xf32>
    %91 = arith.truncf %90 : vector<16x32xf32> to vector<16x32xbf16>
    %c0_31 = arith.constant 0 : index
    %c0_32 = arith.constant 0 : index
    %c0_33 = arith.constant 0 : index
    %92 = vector.load %arg8[%c0_31, %c0_32, %c0_33] : memref<1x32x64xbf16, #tpu.memory_space<vmem>>, vector<1x32x64xbf16>
    %93 = vector.shape_cast %92 : vector<1x32x64xbf16> to vector<32x64xbf16>
    %cst_34 = arith.constant dense<0.000000e+00> : vector<16x64xf32>
    %94 = tpu.matmul %91, %93, %cst_34 {dimension_numbers = #tpu.dot_dimension_numbers<[1], [0], [0], [1], [0, 0, 1, 1], [], []>} : vector<16x32xbf16>, vector<32x64xbf16>, vector<16x64xf32> -> vector<16x64xf32>
    %c0_35 = arith.constant 0 : index
    %c0_36 = arith.constant 0 : index
    %c0_37 = arith.constant 0 : index
    %95 = vector.load %arg9[%c0_35, %c0_36, %c0_37] : memref<1x1x64xf32, #tpu.memory_space<vmem>>, vector<1x1x64xf32>
    %96 = vector.shape_cast %95 : vector<1x1x64xf32> to vector<1x64xf32>
    %97 = vector.broadcast %96 : vector<1x64xf32> to vector<16x64xf32>
    %98 = arith.addf %94, %97 : vector<16x64xf32>
    %cst_38 = arith.constant 0.000000e+00 : f32
    %99 = vector.broadcast %cst_38 : f32 to vector<16x64xf32>
    %100 = arith.maximumf %98, %99 : vector<16x64xf32>
    %101 = arith.truncf %100 : vector<16x64xf32> to vector<16x64xbf16>
    %c0_39 = arith.constant 0 : index
    %c0_40 = arith.constant 0 : index
    %c0_41 = arith.constant 0 : index
    %102 = vector.load %arg10[%c0_39, %c0_40, %c0_41] : memref<1x64x32xbf16, #tpu.memory_space<vmem>>, vector<1x64x32xbf16>
    %103 = vector.shape_cast %102 : vector<1x64x32xbf16> to vector<64x32xbf16>
    %cst_42 = arith.constant dense<0.000000e+00> : vector<16x32xf32>
    %104 = tpu.matmul %101, %103, %cst_42 {dimension_numbers = #tpu.dot_dimension_numbers<[1], [0], [0], [1], [0, 0, 1, 1], [], []>} : vector<16x64xbf16>, vector<64x32xbf16>, vector<16x32xf32> -> vector<16x32xf32>
    %105 = vector.broadcast %14 : vector<1x32xf32> to vector<16x32xf32>
    %106 = arith.addf %104, %105 : vector<16x32xf32>
    %107 = arith.addf %90, %106 : vector<16x32xf32>
    %cst_43 = arith.constant dense<0.000000e+00> : vector<16xf32>
    %108 = vector.multi_reduction <add>, %107, %cst_43 [1] : vector<16x32xf32> to vector<16xf32>
    %109 = vector.shape_cast %108 : vector<16xf32> to vector<16x1xf32>
    %cst_44 = arith.constant 3.200000e+01 : f32
    %110 = vector.broadcast %cst_44 : f32 to vector<16x1xf32>
    %111 = arith.divf %109, %110 : vector<16x1xf32>
    %112 = vector.broadcast %111 : vector<16x1xf32> to vector<16x32xf32>
    %113 = arith.subf %107, %112 : vector<16x32xf32>
    %114 = arith.mulf %113, %113 : vector<16x32xf32>
    %cst_45 = arith.constant dense<0.000000e+00> : vector<16xf32>
    %115 = vector.multi_reduction <add>, %114, %cst_45 [1] : vector<16x32xf32> to vector<16xf32>
    %116 = vector.shape_cast %115 : vector<16xf32> to vector<16x1xf32>
    %cst_46 = arith.constant 3.200000e+01 : f32
    %117 = vector.broadcast %cst_46 : f32 to vector<16x1xf32>
    %118 = arith.divf %116, %117 : vector<16x1xf32>
    %119 = vector.broadcast %111 : vector<16x1xf32> to vector<16x32xf32>
    %120 = arith.subf %107, %119 : vector<16x32xf32>
    %cst_47 = arith.constant 9.99999974E-6 : f32
    %121 = vector.broadcast %cst_47 : f32 to vector<16x1xf32>
    %122 = arith.addf %118, %121 : vector<16x1xf32>
    %123 = math.rsqrt %122 : vector<16x1xf32>
    %124 = vector.broadcast %123 : vector<16x1xf32> to vector<16x32xf32>
    %125 = arith.mulf %120, %124 : vector<16x32xf32>
    %126 = vector.broadcast %15 : vector<1x32xf32> to vector<16x32xf32>
    %127 = arith.mulf %125, %126 : vector<16x32xf32>
    %128 = vector.broadcast %16 : vector<1x32xf32> to vector<16x32xf32>
    %129 = arith.addf %127, %128 : vector<16x32xf32>
    %130 = vector.shape_cast %129 : vector<16x32xf32> to vector<2x8x32xf32>
    %c0_48 = arith.constant 0 : index
    %c0_49 = arith.constant 0 : index
    %c0_50 = arith.constant 0 : index
    %131 = vector.load %arg13[%c0_48, %c0_49, %c0_50] : memref<2x8x32xf32, #tpu.memory_space<vmem>>, vector<2x8x32xf32>
    tpu.vector_store %arg13[%c0_48, %c0_49, %c0_50], %130 {strides = array<i32>} : memref<2x8x32xf32, #tpu.memory_space<vmem>>, vector<2x8x32xf32>,
    %c1_i32 = arith.constant 1 : i32
    %132 = arith.cmpi eq, %arg1, %c1_i32 : i32
    %133 = arith.extui %132 : i1 to i32
    %c0_i32_51 = arith.constant 0 : i32
    %134 = arith.cmpi ne, %133, %c0_i32_51 : i32
    scf.if %134 {
      %c0_52 = arith.constant 0 : index
      %c0_53 = arith.constant 0 : index
      %c0_54 = arith.constant 0 : index
      %135 = vector.load %arg13[%c0_52, %c0_53, %c0_54] : memref<2x8x32xf32, #tpu.memory_space<vmem>>, vector<2x8x32xf32>
      %c0_55 = arith.constant 0 : index
      %c0_56 = arith.constant 0 : index
      %c0_57 = arith.constant 0 : index
      %136 = vector.load %arg12[%c0_55, %c0_56, %c0_57] : memref<2x8x32xf32, #tpu.memory_space<vmem>>, vector<2x8x32xf32>
      tpu.vector_store %arg12[%c0_55, %c0_56, %c0_57], %135 {strides = array<i32>} : memref<2x8x32xf32, #tpu.memory_space<vmem>>, vector<2x8x32xf32>,
    } else {
    }
    return
  }
  func.func @transform_0(%arg0: i32, %arg1: i32) -> (i32, i32, i32) {
    %c0_i32 = arith.constant 0 : i32
    %c0_i32_0 = arith.constant 0 : i32
    %c0_i32_1 = arith.constant 0 : i32
    return %arg0, %c0_i32, %c0_i32_0 : i32, i32, i32
  }
  func.func @transform_1(%arg0: i32, %arg1: i32) -> (i32, i32) {
    %c0_i32 = arith.constant 0 : i32
    %c0_i32_0 = arith.constant 0 : i32
    %c0_i32_1 = arith.constant 0 : i32
    return %c0_i32, %c0_i32_0 : i32, i32
  }
  func.func @transform_2(%arg0: i32, %arg1: i32) -> (i32, i32, i32) {
    %c0_i32 = arith.constant 0 : i32
    %c0_i32_0 = arith.constant 0 : i32
    %c0_i32_1 = arith.constant 0 : i32
    return %arg1, %c0_i32, %c0_i32_0 : i32, i32, i32
  }
  func.func @transform_3(%arg0: i32, %arg1: i32) -> (i32, i32, i32) {
    %c0_i32 = arith.constant 0 : i32
    %c0_i32_0 = arith.constant 0 : i32
    %c0_i32_1 = arith.constant 0 : i32
    return %arg1, %c0_i32, %c0_i32_0 : i32, i32, i32
  }
  func.func @transform_4(%arg0: i32, %arg1: i32) -> (i32, i32, i32) {
    %c0_i32 = arith.constant 0 : i32
    %c0_i32_0 = arith.constant 0 : i32
    %c0_i32_1 = arith.constant 0 : i32
    return %arg1, %c0_i32, %c0_i32_0 : i32, i32, i32
  }
  func.func @transform_5(%arg0: i32, %arg1: i32) -> (i32, i32, i32) {
    %c0_i32 = arith.constant 0 : i32
    %c0_i32_0 = arith.constant 0 : i32
    %c0_i32_1 = arith.constant 0 : i32
    return %arg1, %c0_i32, %c0_i32_0 : i32, i32, i32
  }
  func.func @transform_6(%arg0: i32, %arg1: i32) -> (i32, i32, i32) {
    %c0_i32 = arith.constant 0 : i32
    %c0_i32_0 = arith.constant 0 : i32
    %c0_i32_1 = arith.constant 0 : i32
    return %arg1, %c0_i32, %c0_i32_0 : i32, i32, i32
  }
  func.func @transform_7(%arg0: i32, %arg1: i32) -> (i32, i32, i32) {
    %c0_i32 = arith.constant 0 : i32
    %c0_i32_0 = arith.constant 0 : i32
    %c0_i32_1 = arith.constant 0 : i32
    return %arg1, %c0_i32, %c0_i32_0 : i32, i32, i32
  }
  func.func @transform_8(%arg0: i32, %arg1: i32) -> (i32, i32, i32) {
    %c0_i32 = arith.constant 0 : i32
    %c0_i32_0 = arith.constant 0 : i32
    %c0_i32_1 = arith.constant 0 : i32
    return %arg1, %c0_i32, %c0_i32_0 : i32, i32, i32
  }
  func.func @transform_9(%arg0: i32, %arg1: i32) -> (i32, i32, i32) {
    %c0_i32 = arith.constant 0 : i32
    %c0_i32_0 = arith.constant 0 : i32
    %c0_i32_1 = arith.constant 0 : i32
    return %arg1, %c0_i32, %c0_i32_0 : i32, i32, i32
  }
  func.func @transform_10(%arg0: i32, %arg1: i32) -> (i32, i32, i32) {
    %c0_i32 = arith.constant 0 : i32
    %c0_i32_0 = arith.constant 0 : i32
    %c0_i32_1 = arith.constant 0 : i32
    return %arg0, %c0_i32, %c0_i32_0 : i32, i32, i32
  }
}

</mosaic_0001>

<bundles_post_ra>
// kernel: transformer_encoder_forward.1
= control target key start
LH: loop header
LB: loop body
LE: loop exit
PB: predicated region body
PF: predicated region fallthrough
CT: control target
= control target key end

     0   :  { %s7224_s0 = inlined_call_operand.vmem [shape: f32[2,8,32], index: 0, kind: input, shape index: {}]   ;;  %s7225_s1 = inlined_call_operand.vmem [shape: f32[8,32], index: 1, kind: input, shape index: {}]   ;;  %s7226_s2 = inlined_call_operand.vmem [shape: bf16[2,32,32], index: 2, kind: input, shape index: {}]   ;;  %s7227_s3 = inlined_call_operand.vmem [shape: bf16[2,32,32], index: 3, kind: input, shape index: {}]   ;;  %s7228_s4 = inlined_call_operand.vmem [shape: bf16[2,32,32], index: 4, kind: input, shape index: {}]   ;;  %s7229_s5 = inlined_call_operand.vmem [shape: bf16[2,32,32], index: 5, kind: input, shape index: {}]   ;;  %s7230_s6 = inlined_call_operand.vmem [shape: bf16[2,32,64], index: 6, kind: input, shape index: {}]   ;;  %s7231_s7 = inlined_call_operand.vmem [shape: f32[2,1,64], index: 7, kind: input, shape index: {}]   ;;  %s7232_s8 = inlined_call_operand.vmem [shape: bf16[2,64,32], index: 8, kind: input, shape index: {}]   ;;  %s7233_s9 = inlined_call_operand.vmem [shape: f32[2,9,32], index: 9, kind: input, shape index: {}]   ;;  %s7234_s10 = inlined_call_operand.hbm [shape: f32[2,8,32], index: 10, kind: output, shape index: {}]  }
   0x1   :  { %7235 = sst [smem:[#allocation7_spill]] %s7226_s2 }
   0x2   :  { %7236 = sst [smem:[#allocation8_spill]] %s7227_s3 }
   0x3   :  { %15 = vsyncpa [#allocation4], 0  ;;  %s6074_s13 = smov 0   ;;  %s6076_s14 = smov 0  }
   0x4   :  { %s6078_s15 = smov 0  }
   0x5 LB: > { %s30_s17 = sadd.s32 1, %s5993_s14  ;;  %p5297_p1 = scmp.ge.s32.totalorder %s5997_s15, 1  ;;  %s5997_s15 = sphi %s6078_s15, %s21_s15   ;;  %s5993_s14 = sphi %s6076_s14, %s7245_s14   ;;  %s5989_s13 = sphi %s6074_s13, %s7244_s13  }
   0x6   : > { %p31_p0 = scmp.ge.s32.totalorder %s30_s17, 2  ;;  %p404_p2 = scmp.lt.s32.totalorder %s5997_s15, 3 }
   0x8   : > { %s7247_s17 = smov (%p31_p0, %s30_s17), 0  ;;  %p405_p3 = pnand %p5297_p1, %p404_p2 }
   0x9   : > { %7237 = sst [smem:[#allocation6_spill]] %s7247_s17  ;;  %p481_p4 = scmp.lt.s32.totalorder (!%p405_p3), %s5989_s13, 1 }
   0xa   : > { %408 = sbr.rel (%p405_p3) target bundleno = 2725 (0xaa5), region = 60  ;;  %s7238_s2 = sld [smem:[#allocation7_spill]] (!%p405_p3) }
   0xb   : > { %s7239_s3 = sld [smem:[#allocation8_spill]] (!%p405_p3)  ;;  %p5312_p5 = scmp.ne.s32.totalorder (!%p405_p3), %s5989_s13, 0 }
  0x11   : > { %s6097_s18 = scalar_select %p481_p4, %s5989_s13, 1 }
  0x12   : > { %524 = sbr.rel (%p5312_p5) target bundleno = 25 (0x19), region = 64  ;;  %v525_v0 = vld [vmem:[%s7224_s0] sm:$0xff] (!%p5312_p5)  ;;  %v526_v2 = vld [vmem:[%s7224_s0 + $0x8] sm:$0xff] (!%p5312_p5)  ;;  %vm532_vm0 = vcmask (!%p5312_p5), 261120  }
  0x13   : > { %s5436_s19 = sshll.u32 %s6097_s18, 4  ;;  %s5441_s24 = sshll.u32 %s6097_s18, 5  ;;  %v529_v1 = vld [vmem:[%s7225_s1] sm:$0xff] (!%p5312_p5)  ;;  %v527_v3 = vmul.f32 (!%p5312_p5), 5.656854, %v525_v0 }
  0x14   : > { %s6107_s25 = scalar_lea.vmem %s7238_s2, %s5436_s19  ;;  %s490_s28 = scalar_lea.vmem %s7239_s3, %s5436_s19  ;;  %v528_v4 = vmul.f32 (!%p5312_p5), 5.656854, %v526_v2 }
  0x15   : > { %s6115_s11 = scalar_lea.vmem %s7228_s4, %s5436_s19  ;;  %s6120_s17 = scalar_lea.vmem %s7229_s5, %s5436_s19  ;;  %v530_v5 = vadd.f32 (!%p5312_p5), %v529_v1, %v527_v3 }
  0x16   : > { %s6125_s23 = scalar_lea.vmem %s7230_s6, %s5436_s19  ;;  %s6131_s26 = scalar_lea.vmem %s7232_s8, %s5441_s24  ;;  %v531_v6 = vadd.f32 (!%p5312_p5), %v529_v1, %v528_v4 }
  0x17   : > { %s6136_s30 = scalar_lea.vmem %s7233_s9, %s5436_s19  ;;  %533 = vst.msk [vmem:[#allocation2] sm:$0xff] (!%p5312_p5), %vm532_vm0, %v530_v5 }
  0x18   : > { %534 = vst.msk [vmem:[#allocation2 + $0x8] sm:$0xff] (!%p5312_p5), %vm532_vm0, %v531_v6 }
  0x19 PF: > { %v5856_v7 = vld [vmem:[%s490_s28] sm:$0xff]   ;;  %v5999_v8 = vmov 0.0   ;;  %v5858_v10 = vld [vmem:[%s490_s28 + $0x8] sm:$0xff]   ;;  %vm6000_vm1 = vmmov 0   ;;  %vm560_vm2 = vcmask 261120   ;;  %v544_v17 = vlaneseq  ;;  %s6001_s3 = smov 116  }
  0x1a   : > { %5535 = vmatprep.subr.bf16.mxu1 %v5999_v8  ;;  %5527 = vmatprep.subr.bf16.mxu0 %v5999_v8  ;;  %v5857_v9 = vld [vmem:[%s6107_s25] sm:$0xff]   ;;  %v5859_v11 = vld [vmem:[%s6107_s25 + $0x8] sm:$0xff]   ;;  %s6002_s19 = smov 124   ;;  %s6003_s22 = smov 120   ;;  %v6008_v46 = vmov 1983009808  }
  0x1b   : > { %5536 = vmatpush3.bf16.msra.mxu1 %v5856_v7  ;;  %5539 = vmatprep.mubr.msk.bf16.mxu1 %vm6000_vm1, %v5999_v8  ;;  %v5860_v15 = vld [vmem:[%s6115_s11] sm:$0xff]   ;;  %v5861_v16 = vld [vmem:[%s6115_s11 + $0x8] sm:$0xff]   ;;  %v6173_v18 = vshrl.u32 %v544_v17, 7  ;;  %s6004_s25 = smov 112   ;;  %s6005_s28 = smov 108   ;;  %v776_v47 = vunpack.c.l.s4 %v6008_v46  ;;  %vm2541_vm3 = vcmask 31744  }
  0x1c   : > { %5528 = vmatpush3.bf16.msra.mxu0 %v5857_v9  ;;  %5537 = vmatprep.subr.bf16.mxu1 %v5999_v8  ;;  %v538_v20 = vld [vmem:[%s6136_s30] sm:$0xff]  ;;  %s6006_s11 = smov 104   ;;  %s6007_s24 = smov 100   ;;  %v6009_v48 = vmov 1934713408   ;;  %vm3474_vm4 = vcmask 1043456  }
  0x1d   : > { %5529 = vmatprep.subr.bf16.mxu0 %v5999_v8  ;;  %5531 = vmatprep.mubr.msk.bf16.mxu0 %vm6000_vm1, %v5999_v8  ;;  %v611_v19 = vsub.s32 1, %v6173_v18  ;;  %v546_v21 = vsub.s32 0, %v6173_v18  ;;  %v672_v38 = vsub.s32 2, %v6173_v18  ;;  %v840_v49 = vunpack.c.l.s4 %v6009_v48  ;;  %s6010_s27 = smov 8   ;;  %s6011_s29 = smov 4  }
  0x1e   : > { %v535_v12 = vld [vmem:[#allocation2] sm:$0xff]  ;;  %v777_v50 = vunpack.c.0.s8 %v776_v47  ;;  %vm3278_vm5 = vcmask 64512   ;;  %s6012_s16 = smov 12   ;;  %s6014_s12 = smov 16   ;;  %vm4812_vm6 = vcmask 97280   ;;  %vm4815_vm7 = vcmask 130048  }
  0x1f   : > { %v536_v13 = vld [vmem:[#allocation2 + $0x8] sm:$0xff]  ;;  %5538 = vmatpush3.bf16.msra.mxu1 %v5858_v10  ;;  %v612_v22 = vrot.slane %v538_v20, %v611_v19  ;;  %v547_v23 = vrot.slane %v538_v20, %v546_v21  ;;  %v673_v41 = vrot.slane %v538_v20, %v672_v38  ;;  %v841_v53 = vunpack.c.0.s8 %v840_v49  ;;  %s6015_s20 = smov 28   ;;  %s6016_s21 = smov 24  }
  0x20   : > { %v537_v14 = vpack.c.bf16 %v536_v13, %v535_v12  ;;  %5530 = vmatpush3.bf16.msra.mxu0 %v5859_v11  ;;  %5551 = vmatprep.subr.bf16.mxu1 %v5999_v8  ;;  %v6262_v54 = vsub.s32 %v777_v50, %v6173_v18  ;;  %vm4818_vm8 = vcmask 162816   ;;  %vm4821_vm9 = vcmask 195584   ;;  %p5431_p6 = scmp.ne.s32.totalorder %s5989_s13, 1 }
  0x21   : > { %5543 = vmatprep.subr.bf16.mxu0 %v5999_v8  ;;  %v6267_v61 = vsub.s32 %v841_v53, %v6173_v18  ;;  %vm4824_vm10 = vcmask 228352   ;;  %vm5040_vm11 = vcmask 523264  }
  0x22   : > { %5540 = vmatmul.mubr.msk.bf16.vlgmr.msra.gmra.mrb[0].mxu1 %vm560_vm2, %v537_v14 }
  0x23   : > { %5532 = vmatmul.mubr.msk.bf16.vlgmr.msra.gmra.mrb[0].mxu0 %vm560_vm2, %v537_v14  ;;  %5553 = vmatprep.mubr.msk.bf16.mxu1 %vm6000_vm1, %v5999_v8 }
  0x24   : > { %5547 = vmatprep.mubr.msk.bf16.mxu0 %vm6000_vm1, %v5999_v8  ;;  %5544 = vmatpush3.bf16.msra.mxu0 %v5860_v15 }
  0x25   : > { %5545 = vmatprep.subr.bf16.mxu0 %v5999_v8 }
  0x28   : > { %5546 = vmatpush3.bf16.msra.mxu0 %v5861_v16 }
  0x29   : > { %5557 = vmatprep.subr.bf16.mxu0 %v5999_v8 }
  0x2b   : > { %5548 = vmatmul.mubr.msk.bf16.vlgmr.msra.gmra.mrb[4].mxu0 %vm560_vm2, %v537_v14 }
  0x2c   : > { %5559 = vmatprep.mubr.msk.bf16.mxu0 %vm6000_vm1, %v5999_v8 }
  0xf5   : > { %v659_v24 = vpop.f32.mrb[0].mxu1 }
  0xf6   : > { %v6178_v25 = vadd.f32 %v659_v24, %v612_v22  ;;  %v5541_v26 = vpop.f32.mrb[1].mxu1  ;;  %v598_v27 = vpop.f32.mrb[0].mxu0 }
  0xf7   : > { %v599_v28 = vadd.f32 %v598_v27, %v547_v23  ;;  %v662_v29 = vpop.f32.mrb[2].mxu1  ;;  %v5533_v30 = vpop.f32.mrb[1].mxu0 }
  0xf8   : > { %1347 = vrot.lane.b32.xlu1 %v6178_v25, %s6001_s3  ;;  %1335 = vrot.lane.b32.xlu0 %v6178_v25, %s6002_s19  ;;  %v5542_v31 = vpop.f32.mrb[3].mxu1  ;;  %v601_v32 = vpop.f32.mrb[2].mxu0  ;;  %v6210_v35 = vadd.f32 %v662_v29, %v612_v22 }
  0xf9   : > { %v6184_v33 = vmul.f32 0.5, %v599_v28  ;;  %v5534_v34 = vpop.f32.mrb[3].mxu0  ;;  %v602_v36 = vadd.f32 %v601_v32, %v547_v23 }
  0xfb   : > { %v6216_v37 = vmul.f32 0.5, %v602_v36 }
  0xfc   : > { %1341 = vrot.lane.b32.xlu0 %v6178_v25, %s6003_s22  ;;  %731 = vrot.lane.b32.xlu1 %v6184_v33, %s6002_s19 }
  0xfe   : > { %v720_v39 = vpop.f32.mrb[4].mxu0 }
  0xff   : > { %v5549_v40 = vpop.f32.mrb[5].mxu0  ;;  %v6243_v44 = vadd.f32 %v720_v39, %v673_v41 }
 0x100   : > { %737 = vrot.lane.b32.xlu0 %v6184_v33, %s6003_s22  ;;  %743 = vrot.lane.b32.xlu1 %v6184_v33, %s6001_s3  ;;  %v723_v42 = vpop.f32.mrb[6].mxu0 }
 0x101   : > { %v5550_v43 = vpop.f32.mrb[7].mxu0  ;;  %v6245_v45 = vadd.f32 %v723_v42, %v673_v41 }
 0x104   : > { %1353 = vrot.lane.b32.xlu0 %v6178_v25, %s6004_s25  ;;  %1359 = vrot.lane.b32.xlu1 %v6178_v25, %s6005_s28 }
 0x108   : > { %1365 = vrot.lane.b32.xlu0 %v6178_v25, %s6006_s11  ;;  %1371 = vrot.lane.b32.xlu1 %v6178_v25, %s6007_s24 }
 0x10c   : > { %749 = vrot.lane.b32.xlu0 %v6184_v33, %s6004_s25  ;;  %755 = vrot.lane.b32.xlu1 %v6184_v33, %s6005_s28 }
 0x110   : > { %761 = vrot.lane.b32.xlu0 %v6184_v33, %s6006_s11  ;;  %767 = vrot.lane.b32.xlu1 %v6184_v33, %s6007_s24 }
 0x114   : > { %1337 = vrot.lane.b32.xlu0 %v6210_v35, %s6002_s19  ;;  %1343 = vrot.lane.b32.xlu1 %v6210_v35, %s6003_s22 }
 0x118   : > { %1349 = vrot.lane.b32.xlu0 %v6210_v35, %s6001_s3  ;;  %733 = vrot.lane.b32.xlu1 %v6216_v37, %s6002_s19 }
 0x11c   : > { %739 = vrot.lane.b32.xlu0 %v6216_v37, %s6003_s22  ;;  %745 = vrot.lane.b32.xlu1 %v6216_v37, %s6001_s3 }
 0x120   : > { %1355 = vrot.lane.b32.xlu0 %v6210_v35, %s6004_s25  ;;  %1361 = vrot.lane.b32.xlu1 %v6210_v35, %s6005_s28 }
 0x124   : > { %1367 = vrot.lane.b32.xlu0 %v6210_v35, %s6006_s11  ;;  %1373 = vrot.lane.b32.xlu1 %v6210_v35, %s6007_s24 }
 0x128   : > { %751 = vrot.lane.b32.xlu0 %v6216_v37, %s6004_s25  ;;  %757 = vrot.lane.b32.xlu1 %v6216_v37, %s6005_s28 }
 0x12c   : > { %763 = vrot.lane.b32.xlu0 %v6216_v37, %s6006_s11  ;;  %769 = vrot.lane.b32.xlu1 %v6216_v37, %s6007_s24 }
 0x130   : > { %1939 = vrot.lane.b32.xlu1 %v6243_v44, %s6002_s19  ;;  %1945 = vrot.lane.b32.xlu0 %v6243_v44, %s6003_s22 }
 0x134   : > { %1951 = vrot.lane.b32.xlu1 %v6243_v44, %s6001_s3  ;;  %1957 = vrot.lane.b32.xlu0 %v6243_v44, %s6004_s25 }
 0x138   : > { %1963 = vrot.lane.b32.xlu1 %v6243_v44, %s6005_s28  ;;  %1975 = vrot.lane.b32.xlu0 %v6243_v44, %s6007_s24 }
 0x13c   : > { %1969 = vrot.lane.b32.xlu1 %v6243_v44, %s6006_s11 }
 0x16a   : > { %v1348_v51 = vpop.permute.xlu1 %1347  ;;  %v1336_v52 = vpop.permute.xlu0 %1335 }
 0x16b   : > { %v1393_v55 = vcombine.low %v1336_v52, %v1348_v51  ;;  %v1394_v56 = vcombine.high %v1336_v52, %v1348_v51 }
 0x16d   : > { %v1401_v62 = vrot.slane %v1393_v55, %v6262_v54  ;;  %v1408_v63 = vrot.slane %v1394_v56, %v6262_v54 }
 0x16e   : > { %v1342_v57 = vpop.permute.xlu0 %1341  ;;  %v732_v58 = vpop.permute.xlu1 %731 }
 0x16f   : > { %v1377_v59 = vcombine.low %v6178_v25, %v1342_v57  ;;  %v1378_v60 = vcombine.high %v6178_v25, %v1342_v57 }
 0x171   : > { %v1385_v0 = vrot.slane %v1377_v59, %v6262_v54  ;;  %v1392_v1 = vrot.slane %v1378_v60, %v6262_v54 }
 0x172   : > { %v738_v2 = vpop.permute.xlu0 %737  ;;  %v744_v3 = vpop.permute.xlu1 %743 }
 0x173   : > { %v1441_v4 = vcombine.low %v1385_v0, %v1401_v62  ;;  %v1442_v5 = vcombine.high %v1385_v0, %v1401_v62  ;;  %v1457_v6 = vcombine.low %v1392_v1, %v1408_v63  ;;  %v1458_v7 = vcombine.high %v1392_v1, %v1408_v63 }
 0x174   : > { %v773_v9 = vcombine.low %v6184_v33, %v738_v2  ;;  %v774_v10 = vcombine.high %v6184_v33, %v738_v2  ;;  %v789_v11 = vcombine.low %v732_v58, %v744_v3  ;;  %v790_v12 = vcombine.high %v732_v58, %v744_v3 }
 0x175   : > { %v1449_v13 = vrot.slane %v1441_v4, %v6267_v61  ;;  %v1456_v14 = vrot.slane %v1442_v5, %v6267_v61  ;;  %v1465_v15 = vrot.slane %v1457_v6, %v6267_v61  ;;  %v1472_v16 = vrot.slane %v1458_v7, %v6267_v61 }
 0x176   : > { %v781_v17 = vrot.slane %v773_v9, %v6262_v54  ;;  %v788_v19 = vrot.slane %v774_v10, %v6262_v54  ;;  %v797_v20 = vrot.slane %v789_v11, %v6262_v54  ;;  %v804_v21 = vrot.slane %v790_v12, %v6262_v54  ;;  %v1354_v22 = vpop.permute.xlu0 %1353  ;;  %v1360_v23 = vpop.permute.xlu1 %1359 }
 0x177   : > { %v5338_v24 = vcombine.low %v1449_v13, %v1456_v14  ;;  %v5340_v25 = vcombine.high %v1449_v13, %v1456_v14  ;;  %v5342_v26 = vcombine.low %v1465_v15, %v1472_v16  ;;  %v5344_v27 = vcombine.high %v1465_v15, %v1472_v16 }
 0x178   : > { %v837_v28 = vcombine.low %v781_v17, %v797_v20  ;;  %v838_v29 = vcombine.high %v781_v17, %v797_v20  ;;  %v853_v30 = vcombine.low %v788_v19, %v804_v21  ;;  %v854_v31 = vcombine.high %v788_v19, %v804_v21 }
 0x179   : > { %v6284_v32 = vrot.slane %v5338_v24, %v6262_v54  ;;  %v6287_v33 = vrot.slane %v5340_v25, %v6262_v54  ;;  %v6290_v34 = vrot.slane %v5342_v26, %v6262_v54  ;;  %v6293_v36 = vrot.slane %v5344_v27, %v6262_v54 }
 0x17a   : > { %v845_v38 = vrot.slane %v837_v28, %v6267_v61  ;;  %v852_v39 = vrot.slane %v838_v29, %v6267_v61  ;;  %v861_v40 = vrot.slane %v853_v30, %v6267_v61  ;;  %v868_v41 = vrot.slane %v854_v31, %v6267_v61  ;;  %v1366_v42 = vpop.permute.xlu0 %1365  ;;  %v1372_v43 = vpop.permute.xlu1 %1371 }
 0x17b   : > { %v1409_v46 = vcombine.low %v1354_v22, %v1366_v42  ;;  %v1410_v47 = vcombine.high %v1354_v22, %v1366_v42  ;;  %v1425_v48 = vcombine.low %v1360_v23, %v1372_v43  ;;  %v1426_v49 = vcombine.high %v1360_v23, %v1372_v43 }
 0x17c   : > { %v5322_v50 = vcombine.low %v845_v38, %v852_v39  ;;  %v5324_v51 = vcombine.high %v845_v38, %v852_v39  ;;  %v5326_v52 = vcombine.low %v861_v40, %v868_v41  ;;  %v5328_v53 = vcombine.high %v861_v40, %v868_v41 }
 0x17d   : > { %v1417_v55 = vrot.slane %v1409_v46, %v6262_v54  ;;  %v1424_v56 = vrot.slane %v1410_v47, %v6262_v54  ;;  %v1433_v57 = vrot.slane %v1425_v48, %v6262_v54  ;;  %v1440_v58 = vrot.slane %v1426_v49, %v6262_v54 }
 0x17e   : > { %v6304_v59 = vrot.slane %v5322_v50, %v6262_v54  ;;  %v6307_v60 = vrot.slane %v5324_v51, %v6262_v54  ;;  %v6310_v62 = vrot.slane %v5326_v52, %v6262_v54  ;;  %v6313_v63 = vrot.slane %v5328_v53, %v6262_v54  ;;  %v750_v0 = vpop.permute.xlu0 %749  ;;  %v756_v1 = vpop.permute.xlu1 %755 }
 0x17f   : > { %v1473_v2 = vcombine.low %v1417_v55, %v1433_v57  ;;  %v1474_v3 = vcombine.high %v1417_v55, %v1433_v57  ;;  %v1489_v4 = vcombine.low %v1424_v56, %v1440_v58  ;;  %v1490_v5 = vcombine.high %v1424_v56, %v1440_v58 }
 0x180   : > { %v1109_v6 = vcombine.low %v6304_v59, %v6307_v60  ;;  %v1141_v7 = vcombine.low %v6310_v62, %v6313_v63  ;;  %v1110_v11 = vcombine.high %v6304_v59, %v6307_v60  ;;  %v1713_v16 = vcombine.low %v6284_v32, %v6287_v33 }
 0x181   : > { %v6320_v9 = vrot.slane %v1473_v2, %v6267_v61  ;;  %v6323_v10 = vrot.slane %v1474_v3, %v6267_v61  ;;  %v6328_v14 = vrot.slane %v1489_v4, %v6267_v61  ;;  %v6331_v15 = vrot.slane %v1490_v5, %v6267_v61 }
 0x182   : > { %v762_v12 = vpop.permute.xlu0 %761  ;;  %v768_v13 = vpop.permute.xlu1 %767  ;;  %v1745_v17 = vcombine.low %v6290_v34, %v6293_v36  ;;  %v1117_v25 = vrot.slane %v1109_v6, %v6267_v61  ;;  %v1149_v26 = vrot.slane %v1141_v7, %v6267_v61  ;;  %v1721_v40 = vrot.slane %v1713_v16, %v6267_v61 }
 0x183   : > { %v805_v19 = vcombine.low %v750_v0, %v762_v12  ;;  %v806_v20 = vcombine.high %v750_v0, %v762_v12  ;;  %v821_v21 = vcombine.low %v756_v1, %v768_v13  ;;  %v822_v22 = vcombine.high %v756_v1, %v768_v13 }
 0x184   : > { %v5339_v23 = vcombine.low %v6320_v9, %v6323_v10  ;;  %v5341_v24 = vcombine.high %v6320_v9, %v6323_v10  ;;  %v5343_v39 = vcombine.low %v6328_v14, %v6331_v15  ;;  %v1753_v41 = vrot.slane %v1745_v17, %v6267_v61 }
 0x185   : > { %v813_v27 = vrot.slane %v805_v19, %v6262_v54  ;;  %v820_v28 = vrot.slane %v806_v20, %v6262_v54  ;;  %v829_v29 = vrot.slane %v821_v21, %v6262_v54  ;;  %v836_v30 = vrot.slane %v822_v22, %v6262_v54 }
 0x186   : > { %v1338_v31 = vpop.permute.xlu0 %1337  ;;  %v1344_v38 = vpop.permute.xlu1 %1343  ;;  %v1777_v49 = vcombine.low %v1721_v40, %v1753_v41  ;;  %v1778_v50 = vcombine.high %v1721_v40, %v1753_v41  ;;  %v5345_v13 = vcombine.high %v6328_v14, %v6331_v15  ;;  %v1142_v14 = vcombine.high %v6310_v62, %v6313_v63 }
 0x187   : > { %v1513_v42 = vcombine.low %v6210_v35, %v1344_v38  ;;  %v869_v43 = vcombine.low %v813_v27, %v829_v29  ;;  %v870_v46 = vcombine.high %v813_v27, %v829_v29  ;;  %v885_v47 = vcombine.low %v820_v28, %v836_v30 }
 0x188   : > { %v886_v48 = vcombine.high %v820_v28, %v836_v30  ;;  %v1514_v51 = vcombine.high %v6210_v35, %v1344_v38  ;;  %v1921_v0 = vpack.c.bf16 %v1777_v49, %v1777_v49  ;;  %v1922_v1 = vpack.c.bf16 %v1778_v50, %v1778_v50 }
 0x189   : > { %v1521_v52 = vrot.slane %v1513_v42, %v6262_v54  ;;  %v877_v53 = vrot.slane %v869_v43, %v6267_v61  ;;  %v884_v55 = vrot.slane %v870_v46, %v6267_v61  ;;  %v893_v56 = vrot.slane %v885_v47, %v6267_v61 }
 0x18a   : > { %v900_v57 = vrot.slane %v886_v48, %v6267_v61  ;;  %v1350_v58 = vpop.permute.xlu0 %1349  ;;  %v2546_v35 = vsel %vm2541_vm3, %v1921_v0, 0  ;;  %v2592_v9 = vsel %vm2541_vm3, %v1922_v1, 0  ;;  %v1528_v19 = vrot.slane %v1514_v51, %v6262_v54  ;;  %v734_v20 = vpop.permute.xlu1 %733 }
 0x18b   : > { %v1529_v2 = vcombine.low %v1338_v31, %v1350_v58  ;;  %v1530_v3 = vcombine.high %v1338_v31, %v1350_v58  ;;  %v5323_v4 = vcombine.low %v877_v53, %v884_v55  ;;  %v5325_v5 = vcombine.high %v877_v53, %v884_v55  ;;  %5552 = vmatpush3.bf16.xpose.msra.mxu1 %v2546_v35 }
 0x18c   : > { %v5327_v6 = vcombine.low %v893_v56, %v900_v57  ;;  %v5329_v7 = vcombine.high %v893_v56, %v900_v57  ;;  %5558 = vmatpush3.bf16.xpose.msra.mxu0 %v2592_v9  ;;  %v6380_v15 = vrot.slane %v5339_v23, %v6262_v54  ;;  %v6383_v29 = vrot.slane %v5341_v24, %v6262_v54 }
 0x18d   : > { %v1537_v10 = vrot.slane %v1529_v2, %v6262_v54  ;;  %v1544_v12 = vrot.slane %v1530_v3, %v6262_v54  ;;  %v6365_v16 = vrot.slane %v5323_v4, %v6262_v54  ;;  %v6368_v17 = vrot.slane %v5325_v5, %v6262_v54  ;;  %5563 = vmatprep.subr.bf16.mxu1 %v5999_v8 }
 0x18e   : > { %v6372_v21 = vrot.slane %v5327_v6, %v6262_v54  ;;  %v6375_v22 = vrot.slane %v5329_v7, %v6262_v54  ;;  %v6386_v30 = vrot.slane %v5343_v39, %v6262_v54  ;;  %v740_v31 = vpop.permute.xlu0 %739  ;;  %5569 = vmatprep.subr.bf16.mxu0 %v5999_v8  ;;  %v1173_v63 = vcombine.low %v1117_v25, %v1149_v26 }
 0x18f   : > { %v1577_v27 = vcombine.low %v1521_v52, %v1537_v10  ;;  %v1578_v28 = vcombine.high %v1521_v52, %v1537_v10  ;;  %v1593_v41 = vcombine.low %v1528_v19, %v1544_v12  ;;  %v1594_v62 = vcombine.high %v1528_v19, %v1544_v12 }
 0x190   : > { %v1174_v23 = vcombine.high %v1117_v25, %v1149_v26  ;;  %v1714_v24 = vcombine.high %v6284_v32, %v6287_v33  ;;  %v1746_v39 = vcombine.high %v6290_v34, %v6293_v36  ;;  %v6401_v42 = vrot.slane %v5345_v13, %v6262_v54  ;;  %v746_v33 = vpop.permute.xlu1 %745 }
 0x191   : > { %v6390_v38 = vrot.slane %v1577_v27, %v6267_v61  ;;  %v6393_v40 = vrot.slane %v1578_v28, %v6267_v61  ;;  %v1125_v43 = vcombine.low %v6365_v16, %v6368_v17  ;;  %v1126_v46 = vcombine.high %v6365_v16, %v6368_v17 }
 0x192   : > { %v1157_v47 = vcombine.low %v6372_v21, %v6375_v22  ;;  %v1317_v48 = vpack.c.bf16 %v1173_v63, %v1173_v63  ;;  %v1318_v25 = vpack.c.bf16 %v1174_v23, %v1174_v23  ;;  %v1728_v26 = vrot.slane %v1714_v24, %v6267_v61  ;;  %v6424_v55 = vpop.permute.xlu0 %1355 }
 0x193   : > { %v1760_v32 = vrot.slane %v1746_v39, %v6267_v61  ;;  %v6412_v34 = vrot.slane %v1593_v41, %v6267_v61  ;;  %v6415_v36 = vrot.slane %v1594_v62, %v6267_v61  ;;  %v5346_v49 = vcombine.low %v6390_v38, %v6393_v40 }
 0x194   : > { %v5348_v50 = vcombine.high %v6390_v38, %v6393_v40  ;;  %5554 = vmatmul.mubr.msk.bf16.vlgmr.msra.gmra.mrb[4].mxu1 %vm2541_vm3, %v1317_v48  ;;  %5560 = vmatmul.mubr.msk.bf16.vlgmr.msra.gmra.mrb[8].mxu0 %vm2541_vm3, %v1318_v25  ;;  %v909_v53 = vcombine.low %v6216_v37, %v740_v31  ;;  %v910_v56 = vcombine.high %v6216_v37, %v740_v31  ;;  %v1362_v9 = vpop.permute.xlu1 %1361 }
 0x195   : > { %v1779_v51 = vcombine.low %v1728_v26, %v1760_v32  ;;  %v1780_v52 = vcombine.high %v1728_v26, %v1760_v32  ;;  %v925_v57 = vcombine.low %v734_v20, %v746_v33  ;;  %v926_v58 = vcombine.high %v734_v20, %v746_v33  ;;  %5565 = vmatprep.mubr.msk.bf16.mxu1 %vm6000_vm1, %v5999_v8 }
 0x196   : > { %5571 = vmatprep.mubr.msk.bf16.mxu0 %vm6000_vm1, %v5999_v8  ;;  %v917_v2 = vrot.slane %v909_v53, %v6262_v54  ;;  %v1124_v3 = vrot.slane %v1110_v11, %v6267_v61  ;;  %v924_v4 = vrot.slane %v910_v56, %v6262_v54  ;;  %v1156_v6 = vrot.slane %v1142_v14, %v6267_v61  ;;  %v1368_v27 = vpop.permute.xlu0 %1367 }
 0x197   : > { %v1923_v0 = vpack.c.bf16 %v1779_v51, %v1779_v51  ;;  %v1924_v1 = vpack.c.bf16 %v1780_v52, %v1780_v52  ;;  %v933_v37 = vrot.slane %v925_v57, %v6262_v54  ;;  %v940_v5 = vrot.slane %v926_v58, %v6262_v54 }
 0x198   : > { %v1729_v10 = vcombine.low %v6380_v15, %v6383_v29  ;;  %v1761_v59 = vcombine.low %v6386_v30, %v6401_v42  ;;  %v1175_v19 = vcombine.low %v1124_v3, %v1156_v6  ;;  %v1176_v20 = vcombine.high %v1124_v3, %v1156_v6  ;;  %v1374_v51 = vpop.permute.xlu1 %1373 }
 0x199   : > { %v2638_v7 = vsel %vm2541_vm3, %v1923_v0, 0  ;;  %v2684_v35 = vsel %vm2541_vm3, %v1924_v1, 0  ;;  %v973_v60 = vcombine.low %v917_v2, %v933_v37  ;;  %v974_v11 = vcombine.high %v917_v2, %v933_v37 }
 0x19a   : > { %5564 = vmatpush3.bf16.xpose.msra.mxu1 %v2638_v7  ;;  %5570 = vmatpush3.bf16.xpose.msra.mxu0 %v2684_v35  ;;  %v989_v12 = vcombine.low %v924_v4, %v940_v5  ;;  %v990_v13 = vcombine.high %v924_v4, %v940_v5  ;;  %v1737_v38 = vrot.slane %v1729_v10, %v6267_v61 }
 0x19b   : > { %5575 = vmatprep.subr.bf16.mxu1 %v5999_v8  ;;  %5581 = vmatprep.subr.bf16.mxu0 %v5999_v8  ;;  %v981_v28 = vrot.slane %v973_v60, %v6267_v61  ;;  %v988_v14 = vrot.slane %v974_v11, %v6267_v61  ;;  %v1158_v40 = vcombine.high %v6372_v21, %v6375_v22 }
 0x19c   : > { %v997_v31 = vrot.slane %v989_v12, %v6267_v61  ;;  %v1004_v41 = vrot.slane %v990_v13, %v6267_v61  ;;  %v1319_v62 = vpack.c.bf16 %v1175_v19, %v1175_v19  ;;  %v1769_v63 = vrot.slane %v1761_v59, %v6267_v61  ;;  %v758_v10 = vpop.permute.xlu1 %757 }
 0x19d   : > { %v5330_v23 = vcombine.low %v981_v28, %v988_v14  ;;  %v5332_v24 = vcombine.high %v981_v28, %v988_v14  ;;  %v1320_v39 = vpack.c.bf16 %v1176_v20, %v1176_v20  ;;  %v1545_v48 = vcombine.low %v6424_v55, %v1368_v27 }
 0x19e   : > { %v5334_v25 = vcombine.low %v997_v31, %v1004_v41  ;;  %v1781_v26 = vcombine.low %v1737_v38, %v1769_v63  ;;  %v1782_v32 = vcombine.high %v1737_v38, %v1769_v63  ;;  %v1546_v33 = vcombine.high %v6424_v55, %v1368_v27 }
 0x19f   : > { %v6459_v52 = vrot.slane %v5346_v49, %v6262_v54  ;;  %v6462_v53 = vrot.slane %v5348_v50, %v6262_v54  ;;  %v5350_v56 = vcombine.low %v6412_v34, %v6415_v36  ;;  %v5352_v57 = vcombine.high %v6412_v34, %v6415_v36  ;;  %v752_v49 = vpop.permute.xlu0 %751 }
 0x1a0   : > { %v6469_v58 = vrot.slane %v5330_v23, %v6262_v54  ;;  %v5336_v0 = vcombine.high %v997_v31, %v1004_v41  ;;  %v1925_v55 = vpack.c.bf16 %v1781_v26, %v1781_v26  ;;  %v6474_v1 = vrot.slane %v5332_v24, %v6262_v54 }
 0x1a1   : > { %5566 = vmatmul.mubr.msk.bf16.vlgmr.msra.gmra.mrb[8].mxu1 %vm2541_vm3, %v1319_v62  ;;  %5572 = vmatmul.mubr.msk.bf16.vlgmr.msra.gmra.mrb[12].mxu0 %vm2541_vm3, %v1320_v39  ;;  %v1926_v50 = vpack.c.bf16 %v1782_v32, %v1782_v32  ;;  %v1553_v2 = vrot.slane %v1545_v48, %v6262_v54  ;;  %v1561_v3 = vcombine.low %v1362_v9, %v1374_v51  ;;  %v770_v32 = vpop.permute.xlu1 %769 }
 0x1a2   : > { %5577 = vmatprep.mubr.msk.bf16.mxu1 %vm6000_vm1, %v5999_v8  ;;  %v6480_v34 = vrot.slane %v5334_v25, %v6262_v54  ;;  %v2730_v36 = vsel %vm2541_vm3, %v1925_v55, 0  ;;  %v1560_v4 = vrot.slane %v1546_v33, %v6262_v54  ;;  %v1562_v37 = vcombine.high %v1362_v9, %v1374_v51  ;;  %5583 = vmatprep.mubr.msk.bf16.mxu0 %vm6000_vm1, %v5999_v8 }
 0x1a3   : > { %5576 = vmatpush3.bf16.xpose.msra.mxu1 %v2730_v36  ;;  %v2776_v5 = vsel %vm2541_vm3, %v1926_v50, 0  ;;  %v1569_v6 = vrot.slane %v1561_v3, %v6262_v54  ;;  %v1133_v7 = vrot.slane %v1125_v43, %v6267_v61  ;;  %v1165_v35 = vrot.slane %v1157_v47, %v6267_v61  ;;  %v764_v28 = vpop.permute.xlu0 %763 }
 0x1a4   : > { %5582 = vmatpush3.bf16.xpose.msra.mxu0 %v2776_v5  ;;  %v1576_v9 = vrot.slane %v1562_v37, %v6262_v54  ;;  %5587 = vmatprep.subr.bf16.mxu1 %v5999_v8  ;;  %v1730_v59 = vcombine.high %v6380_v15, %v6383_v29  ;;  %v1762_v60 = vcombine.high %v6386_v30, %v6401_v42 }
 0x1a5   : > { %v1609_v11 = vcombine.low %v1553_v2, %v1569_v6  ;;  %v1610_v12 = vcombine.high %v1553_v2, %v1569_v6  ;;  %v1177_v43 = vcombine.low %v1133_v7, %v1165_v35  ;;  %v1178_v13 = vcombine.high %v1133_v7, %v1165_v35  ;;  %5593 = vmatprep.subr.bf16.mxu0 %v5999_v8 }
 0x1a6   : > { %v1625_v19 = vcombine.low %v1560_v4, %v1576_v9  ;;  %v1626_v47 = vcombine.high %v1560_v4, %v1576_v9  ;;  %v1744_v20 = vrot.slane %v1730_v59, %v6267_v61  ;;  %v1776_v27 = vrot.slane %v1762_v60, %v6267_v61 }
 0x1a7   : > { %v6506_v14 = vrot.slane %v5336_v0, %v6262_v54  ;;  %v6509_v15 = vrot.slane %v1609_v11, %v6267_v61  ;;  %v6512_v29 = vrot.slane %v1610_v12, %v6267_v61  ;;  %v1321_v30 = vpack.c.bf16 %v1177_v43, %v1177_v43 }
 0x1a8   : > { %v6515_v42 = vrot.slane %v1625_v19, %v6267_v61  ;;  %v6518_v31 = vrot.slane %v1626_v47, %v6267_v61  ;;  %v1783_v38 = vcombine.low %v1744_v20, %v1776_v27  ;;  %v1784_v41 = vcombine.high %v1744_v20, %v1776_v27 }
 0x1a9   : > { %v6521_v62 = vrot.slane %v5350_v56, %v6262_v54  ;;  %v1322_v63 = vpack.c.bf16 %v1178_v13, %v1178_v13  ;;  %v941_v23 = vcombine.low %v752_v49, %v764_v28  ;;  %v942_v24 = vcombine.high %v752_v49, %v764_v28 }
 0x1aa   : > { %v6524_v39 = vrot.slane %v5352_v57, %v6262_v54  ;;  %v1245_v48 = vcombine.low %v6469_v58, %v6474_v1  ;;  %5578 = vmatmul.mubr.msk.bf16.vlgmr.msra.gmra.mrb[12].mxu1 %vm2541_vm3, %v1321_v30  ;;  %v1927_v25 = vpack.c.bf16 %v1783_v38, %v1783_v38  ;;  %v1928_v26 = vpack.c.bf16 %v1784_v41, %v1784_v41 }
 0x1ab   : > { %v1277_v33 = vcombine.low %v6480_v34, %v6506_v14  ;;  %v5347_v51 = vcombine.low %v6509_v15, %v6512_v29  ;;  %v5349_v56 = vcombine.high %v6509_v15, %v6512_v29  ;;  %v5351_v57 = vcombine.low %v6515_v42, %v6518_v31  ;;  %5584 = vmatmul.mubr.msk.bf16.vlgmr.msra.gmra.mrb[16].mxu0 %vm2541_vm3, %v1322_v63 }
 0x1ac   : > { %v2822_v0 = vsel %vm2541_vm3, %v1927_v25, 0  ;;  %v2868_v55 = vsel %vm2541_vm3, %v1928_v26, 0  ;;  %v949_v49 = vrot.slane %v941_v23, %v6262_v54  ;;  %v956_v50 = vrot.slane %v942_v24, %v6262_v54  ;;  %5589 = vmatprep.mubr.msk.bf16.mxu1 %vm6000_vm1, %v5999_v8  ;;  %5595 = vmatprep.mubr.msk.bf16.mxu0 %vm6000_vm1, %v5999_v8 }
 0x1ad   : > { %5588 = vmatpush3.bf16.xpose.msra.mxu1 %v2822_v0  ;;  %5594 = vmatpush3.bf16.xpose.msra.mxu0 %v2868_v55  ;;  %v957_v2 = vcombine.low %v758_v10, %v770_v32  ;;  %v958_v3 = vcombine.high %v758_v10, %v770_v32  ;;  %v1140_v36 = vrot.slane %v1126_v46, %v6267_v61 }
 0x1ae   : > { %v1172_v4 = vrot.slane %v1158_v40, %v6267_v61  ;;  %5599 = vmatprep.subr.bf16.mxu1 %v5999_v8  ;;  %5605 = vmatprep.subr.bf16.mxu0 %v5999_v8  ;;  %v1849_v37 = vcombine.low %v6459_v52, %v6462_v53  ;;  %v1881_v5 = vcombine.low %v6521_v62, %v6524_v39 }
 0x1af   : > { %v5353_v6 = vcombine.high %v6515_v42, %v6518_v31  ;;  %v965_v16 = vrot.slane %v957_v2, %v6262_v54  ;;  %v972_v17 = vrot.slane %v958_v3, %v6262_v54  ;;  %v1253_v21 = vrot.slane %v1245_v48, %v6267_v61 }
 0x1b0   : > { %v1179_v22 = vcombine.low %v1140_v36, %v1172_v4  ;;  %v1180_v46 = vcombine.high %v1140_v36, %v1172_v4  ;;  %v1857_v40 = vrot.slane %v1849_v37, %v6267_v61  ;;  %v1889_v7 = vrot.slane %v1881_v5, %v6267_v61 }
 0x1b1   : > { %v1005_v35 = vcombine.low %v949_v49, %v965_v16  ;;  %v1006_v9 = vcombine.high %v949_v49, %v965_v16  ;;  %v1021_v10 = vcombine.low %v956_v50, %v972_v17  ;;  %v1022_v59 = vcombine.high %v956_v50, %v972_v17 }
 0x1b2   : > { %v1323_v60 = vpack.c.bf16 %v1179_v22, %v1179_v22  ;;  %v1324_v11 = vpack.c.bf16 %v1180_v46, %v1180_v46  ;;  %v1913_v12 = vcombine.low %v1857_v40, %v1889_v7  ;;  %v1914_v43 = vcombine.high %v1857_v40, %v1889_v7 }
 0x1b3   : > { %v1013_v13 = vrot.slane %v1005_v35, %v6267_v61  ;;  %v1020_v19 = vrot.slane %v1006_v9, %v6267_v61  ;;  %v1029_v47 = vrot.slane %v1021_v10, %v6267_v61  ;;  %v1285_v20 = vrot.slane %v1277_v33, %v6267_v61 }
 0x1b4   : > { %v1036_v27 = vrot.slane %v1022_v59, %v6267_v61  ;;  %5590 = vmatmul.mubr.msk.bf16.vlgmr.msra.gmra.mrb[16].mxu1 %vm2541_vm3, %v1323_v60  ;;  %5596 = vmatmul.mubr.msk.bf16.vlgmr.msra.gmra.mrb[20].mxu0 %vm2541_vm3, %v1324_v11  ;;  %v1929_v28 = vpack.c.bf16 %v1913_v12, %v1913_v12  ;;  %v1930_v15 = vpack.c.bf16 %v1914_v43, %v1914_v43 }
 0x1b5   : > { %v1800_v29 = vrot.slane %v5347_v51, %v6262_v54  ;;  %5601 = vmatprep.mubr.msk.bf16.mxu1 %vm6000_vm1, %v5999_v8  ;;  %v1816_v30 = vrot.slane %v5349_v56, %v6262_v54  ;;  %v1832_v42 = vrot.slane %v5351_v57, %v6262_v54  ;;  %v1848_v31 = vrot.slane %v5353_v6, %v6262_v54 }
 0x1b6   : > { %v2914_v38 = vsel %vm2541_vm3, %v1929_v28, 0  ;;  %5607 = vmatprep.mubr.msk.bf16.mxu0 %vm6000_vm1, %v5999_v8  ;;  %v5331_v41 = vcombine.low %v1013_v13, %v1020_v19  ;;  %v5333_v63 = vcombine.high %v1013_v13, %v1020_v19  ;;  %v2960_v23 = vsel %vm2541_vm3, %v1930_v15, 0 }
 0x1b7   : > { %5600 = vmatpush3.bf16.xpose.msra.mxu1 %v2914_v38  ;;  %v1309_v24 = vcombine.low %v1253_v21, %v1285_v20  ;;  %v5335_v48 = vcombine.low %v1029_v47, %v1036_v27  ;;  %5606 = vmatpush3.bf16.xpose.msra.mxu0 %v2960_v23  ;;  %v1850_v25 = vcombine.high %v6459_v52, %v6462_v53 }
 0x1b8   : > { %5611 = vmatprep.subr.bf16.mxu1 %v5999_v8  ;;  %v1882_v26 = vcombine.high %v6521_v62, %v6524_v39  ;;  %v5337_v32 = vcombine.high %v1029_v47, %v1036_v27  ;;  %v1310_v33 = vcombine.high %v1253_v21, %v1285_v20  ;;  %5617 = vmatprep.subr.bf16.mxu0 %v5999_v8 }
 0x1b9   : > { %v1246_v51 = vcombine.high %v6469_v58, %v6474_v1  ;;  %v1278_v56 = vcombine.high %v6480_v34, %v6506_v14  ;;  %v1864_v57 = vrot.slane %v1850_v25, %v6267_v61  ;;  %v6597_v55 = vrot.slane %v5331_v41, %v6262_v54  ;;  %v1940_v25 = vpop.permute.xlu1 %1939 }
 0x1ba   : > { %v1896_v0 = vrot.slane %v1882_v26, %v6267_v61  ;;  %v1325_v52 = vpack.c.bf16 %v1309_v24, %v1309_v24  ;;  %v1865_v53 = vcombine.low %v1800_v29, %v1816_v30  ;;  %v1897_v62 = vcombine.low %v1832_v42, %v1848_v31  ;;  %v1946_v26 = vpop.permute.xlu0 %1945 }
 0x1bb   : > { %v1212_v39 = vrot.slane %v5333_v63, %v6262_v54  ;;  %v1228_v49 = vrot.slane %v5335_v48, %v6262_v54  ;;  %v1244_v58 = vrot.slane %v5337_v32, %v6262_v54  ;;  %v1326_v1 = vpack.c.bf16 %v1310_v33, %v1310_v33 }
 0x1bc   : > { %v1915_v50 = vcombine.low %v1864_v57, %v1896_v0  ;;  %v1916_v2 = vcombine.high %v1864_v57, %v1896_v0  ;;  %v1873_v34 = vrot.slane %v1865_v53, %v6267_v61  ;;  %v1905_v14 = vrot.slane %v1897_v62, %v6267_v61 }
 0x1bd   : > { %v1260_v4 = vrot.slane %v1246_v51, %v6267_v61  ;;  %v1292_v37 = vrot.slane %v1278_v56, %v6267_v61  ;;  %v1866_v21 = vcombine.high %v1800_v29, %v1816_v30  ;;  %v1261_v22 = vcombine.low %v6597_v55, %v1212_v39  ;;  %v1952_v57 = vpop.permute.xlu1 %1951 }
 0x1be   : > { %5602 = vmatmul.mubr.msk.bf16.vlgmr.msra.gmra.mrb[20].mxu1 %vm2541_vm3, %v1325_v52  ;;  %v1931_v3 = vpack.c.bf16 %v1915_v50, %v1915_v50  ;;  %v1932_v36 = vpack.c.bf16 %v1916_v2, %v1916_v2  ;;  %5608 = vmatmul.mubr.msk.bf16.vlgmr.msra.gmra.mrb[24].mxu0 %vm2541_vm3, %v1326_v1  ;;  %v1917_v5 = vcombine.low %v1873_v34, %v1905_v14 }
 0x1bf   : > { %5613 = vmatprep.mubr.msk.bf16.mxu1 %vm6000_vm1, %v5999_v8  ;;  %5619 = vmatprep.mubr.msk.bf16.mxu0 %vm6000_vm1, %v5999_v8  ;;  %v1918_v17 = vcombine.high %v1873_v34, %v1905_v14  ;;  %v1898_v46 = vcombine.high %v1832_v42, %v1848_v31  ;;  %v1293_v40 = vcombine.low %v1228_v49, %v1244_v58 }
 0x1c0   : > { %v3006_v6 = vsel %vm2541_vm3, %v1931_v3, 0  ;;  %v3052_v16 = vsel %vm2541_vm3, %v1932_v36, 0  ;;  %v1311_v7 = vcombine.low %v1260_v4, %v1292_v37  ;;  %v1312_v35 = vcombine.high %v1260_v4, %v1292_v37 }
 0x1c1   : > { %5612 = vmatpush3.bf16.xpose.msra.mxu1 %v3006_v6  ;;  %5618 = vmatpush3.bf16.xpose.msra.mxu0 %v3052_v16  ;;  %v1933_v9 = vpack.c.bf16 %v1917_v5, %v1917_v5  ;;  %v1934_v10 = vpack.c.bf16 %v1918_v17, %v1918_v17  ;;  %v1880_v59 = vrot.slane %v1866_v21, %v6267_v61 }
 0x1c2   : > { %5623 = vmatprep.subr.bf16.mxu1 %v5999_v8  ;;  %5629 = vmatprep.subr.bf16.mxu0 %v5999_v8  ;;  %v1912_v60 = vrot.slane %v1898_v46, %v6267_v61  ;;  %v1327_v11 = vpack.c.bf16 %v1311_v7, %v1311_v7  ;;  %v1328_v12 = vpack.c.bf16 %v1312_v35, %v1312_v35 }
 0x1c3   : > { %v1269_v43 = vrot.slane %v1261_v22, %v6267_v61  ;;  %v1301_v13 = vrot.slane %v1293_v40, %v6267_v61  ;;  %v3098_v19 = vsel %vm2541_vm3, %v1933_v9, 0  ;;  %v3144_v47 = vsel %vm2541_vm3, %v1934_v10, 0 }
 0x1c4   : > { %v1919_v20 = vcombine.low %v1880_v59, %v1912_v60  ;;  %v1920_v27 = vcombine.high %v1880_v59, %v1912_v60  ;;  %v1262_v28 = vcombine.high %v6597_v55, %v1212_v39  ;;  %v1294_v15 = vcombine.high %v1228_v49, %v1244_v58 }
 0x1c5   : > { %v1313_v29 = vcombine.low %v1269_v43, %v1301_v13  ;;  %v1314_v30 = vcombine.high %v1269_v43, %v1301_v13  ;;  %v1981_v32 = vcombine.low %v6243_v44, %v1946_v26  ;;  %v1982_v33 = vcombine.high %v6243_v44, %v1946_v26 }
 0x1c6   : > { %v1935_v42 = vpack.c.bf16 %v1919_v20, %v1919_v20  ;;  %v1936_v31 = vpack.c.bf16 %v1920_v27, %v1920_v27  ;;  %v1276_v63 = vrot.slane %v1262_v28, %v6267_v61  ;;  %v1308_v23 = vrot.slane %v1294_v15, %v6267_v61  ;;  %v1958_v28 = vpop.permute.xlu0 %1957  ;;  %v1964_v15 = vpop.permute.xlu1 %1963 }
 0x1c7   : > { %v1329_v38 = vpack.c.bf16 %v1313_v29, %v1313_v29  ;;  %v1330_v41 = vpack.c.bf16 %v1314_v30, %v1314_v30  ;;  %v1989_v0 = vrot.slane %v1981_v32, %v6262_v54  ;;  %v1996_v55 = vrot.slane %v1982_v33, %v6262_v54 }
 0x1c8   : > { %5614 = vmatmul.mubr.msk.bf16.vlgmr.msra.gmra.mrb[24].mxu1 %vm2541_vm3, %v1327_v11  ;;  %5620 = vmatmul.mubr.msk.bf16.vlgmr.msra.gmra.mrb[28].mxu0 %vm2541_vm3, %v1328_v12  ;;  %v3190_v24 = vsel %vm2541_vm3, %v1935_v42, 0  ;;  %v3236_v48 = vsel %vm2541_vm3, %v1936_v31, 0  ;;  %v1315_v51 = vcombine.low %v1276_v63, %v1308_v23  ;;  %v1316_v56 = vcombine.high %v1276_v63, %v1308_v23 }
 0x1c9   : > { %5624 = vmatpush3.bf16.xpose.msra.mxu1 %v3098_v19  ;;  %5630 = vmatpush3.bf16.xpose.msra.mxu0 %v3144_v47  ;;  %v1997_v52 = vcombine.low %v1940_v25, %v1952_v57  ;;  %v1998_v53 = vcombine.high %v1940_v25, %v1952_v57 }
 0x1ca   : > { %5625 = vmatprep.mubr.msk.bf16.mxu1 %vm6000_vm1, %v5999_v8  ;;  %5631 = vmatprep.mubr.msk.bf16.mxu0 %vm6000_vm1, %v5999_v8  ;;  %v1331_v44 = vpack.c.bf16 %v1315_v51, %v1315_v51  ;;  %v1332_v62 = vpack.c.bf16 %v1316_v56, %v1316_v56  ;;  %v1976_v29 = vpop.permute.xlu0 %1975  ;;  %v1970_v30 = vpop.permute.xlu1 %1969 }
 0x1cb   : > { %5635 = vmatprep.subr.bf16.mxu1 %v5999_v8  ;;  %5641 = vmatprep.subr.bf16.mxu0 %v5999_v8  ;;  %v2005_v39 = vrot.slane %v1997_v52, %v6262_v54  ;;  %v2012_v49 = vrot.slane %v1998_v53, %v6262_v54  ;;  %v2029_v42 = vcombine.low %v1964_v15, %v1976_v29 }
 0x1cc   : > { %v2030_v31 = vcombine.high %v1964_v15, %v1976_v29 }
 0x1cd   : > { %v2045_v50 = vcombine.low %v1989_v0, %v2005_v39  ;;  %v2046_v2 = vcombine.high %v1989_v0, %v2005_v39  ;;  %v2061_v58 = vcombine.low %v1996_v55, %v2012_v49  ;;  %v2062_v1 = vcombine.high %v1996_v55, %v2012_v49 }
 0x1ce   : > { %v2037_v63 = vrot.slane %v2029_v42, %v6262_v54  ;;  %v2044_v23 = vrot.slane %v2030_v31, %v6262_v54 }
 0x1cf   : > { %v2053_v34 = vrot.slane %v2045_v50, %v6267_v61  ;;  %v2060_v14 = vrot.slane %v2046_v2, %v6267_v61  ;;  %v2069_v3 = vrot.slane %v2061_v58, %v6267_v61  ;;  %v2076_v36 = vrot.slane %v2062_v1, %v6267_v61 }
 0x1d0   : > { %5626 = vmatmul.mubr.msk.bf16.vlgmr.msra.gmra.mrb[28].mxu1 %vm2541_vm3, %v1329_v38  ;;  %5632 = vmatmul.mubr.msk.bf16.vlgmr.msra.gmra.mrb[32].mxu0 %vm2541_vm3, %v1330_v41  ;;  %v2013_v38 = vcombine.low %v1958_v28, %v1970_v30  ;;  %v2014_v41 = vcombine.high %v1958_v28, %v1970_v30 }
 0x1d1   : > { %5636 = vmatpush3.bf16.xpose.msra.mxu1 %v3190_v24  ;;  %5642 = vmatpush3.bf16.xpose.msra.mxu0 %v3236_v48  ;;  %v5354_v4 = vcombine.low %v2053_v34, %v2060_v14  ;;  %v5356_v37 = vcombine.high %v2053_v34, %v2060_v14  ;;  %v5358_v5 = vcombine.low %v2069_v3, %v2076_v36 }
 0x1d2   : > { %5637 = vmatprep.mubr.msk.bf16.mxu1 %vm6000_vm1, %v5999_v8  ;;  %5643 = vmatprep.mubr.msk.bf16.mxu0 %vm6000_vm1, %v5999_v8  ;;  %v5360_v6 = vcombine.high %v2069_v3, %v2076_v36  ;;  %v2021_v24 = vrot.slane %v2013_v38, %v6262_v54  ;;  %v2028_v48 = vrot.slane %v2014_v41, %v6262_v54 }
 0x1d3   : > { %5647 = vmatprep.subr.bf16.mxu1 %v5999_v8  ;;  %5653 = vmatprep.subr.bf16.mxu0 %v5999_v8  ;;  %v2261_v16 = vrot.slane %v5354_v4, %v6262_v54  ;;  %v2277_v17 = vrot.slane %v5356_v37, %v6262_v54  ;;  %v2293_v21 = vrot.slane %v5358_v5, %v6262_v54 }
 0x1d4   : > { %v2309_v22 = vrot.slane %v5360_v6, %v6262_v54  ;;  %v2077_v25 = vcombine.low %v2021_v24, %v2037_v63  ;;  %v2078_v26 = vcombine.high %v2021_v24, %v2037_v63  ;;  %v2093_v32 = vcombine.low %v2028_v48, %v2044_v23 }
 0x1d5   : > { %v2317_v46 = vcombine.low %v2261_v16, %v2277_v17  ;;  %v2318_v43 = vcombine.high %v2261_v16, %v2277_v17  ;;  %v2094_v33 = vcombine.high %v2028_v48, %v2044_v23 }
 0x1d6   : > { %v2349_v40 = vcombine.low %v2293_v21, %v2309_v22  ;;  %v2350_v13 = vcombine.high %v2293_v21, %v2309_v22  ;;  %v2085_v51 = vrot.slane %v2077_v25, %v6267_v61  ;;  %v2092_v56 = vrot.slane %v2078_v26, %v6267_v61 }
 0x1d7   : > { %v2325_v7 = vrot.slane %v2317_v46, %v6267_v61  ;;  %v2332_v19 = vrot.slane %v2318_v43, %v6267_v61  ;;  %v2101_v57 = vrot.slane %v2093_v32, %v6267_v61  ;;  %v2108_v0 = vrot.slane %v2094_v33, %v6267_v61 }
 0x1d8   : > { %5638 = vmatmul.mubr.msk.bf16.vlgmr.msra.gmra.mrb[32].mxu1 %vm2541_vm3, %v1331_v44  ;;  %5644 = vmatmul.mubr.msk.bf16.vlgmr.msra.gmra.mrb[36].mxu0 %vm2541_vm3, %v1332_v62  ;;  %v2357_v35 = vrot.slane %v2349_v40, %v6267_v61  ;;  %v2364_v47 = vrot.slane %v2350_v13, %v6267_v61  ;;  %v5355_v55 = vcombine.low %v2085_v51, %v2092_v56 }
 0x1d9   : > { %5649 = vmatprep.mubr.msk.bf16.mxu1 %vm6000_vm1, %v5999_v8  ;;  %5655 = vmatprep.mubr.msk.bf16.mxu0 %vm6000_vm1, %v5999_v8  ;;  %v5357_v52 = vcombine.high %v2085_v51, %v2092_v56  ;;  %v5359_v53 = vcombine.low %v2101_v57, %v2108_v0  ;;  %v5361_v44 = vcombine.high %v2101_v57, %v2108_v0 }
 0x1da   : > { %v2381_v9 = vcombine.low %v2325_v7, %v2357_v35  ;;  %v2382_v10 = vcombine.high %v2325_v7, %v2357_v35  ;;  %v6672_v20 = vcombine.low %v2332_v19, %v2364_v47  ;;  %v6674_v27 = vcombine.high %v2332_v19, %v2364_v47 }
 0x1db   : > { %v2268_v62 = vrot.slane %v5355_v55, %v6262_v54  ;;  %v2284_v39 = vrot.slane %v5357_v52, %v6262_v54  ;;  %v2300_v49 = vrot.slane %v5359_v53, %v6262_v54  ;;  %v2316_v50 = vrot.slane %v5361_v44, %v6262_v54 }
 0x1dc   : > { %v2525_v59 = vpack.c.bf16 %v2381_v9, %v2381_v9  ;;  %v2526_v60 = vpack.c.bf16 %v2382_v10, %v2382_v10 }
 0x1dd   : > { %v2333_v36 = vcombine.low %v2268_v62, %v2284_v39  ;;  %v2365_v4 = vcombine.low %v2300_v49, %v2316_v50  ;;  %v2334_v6 = vcombine.high %v2268_v62, %v2284_v39  ;;  %v2366_v16 = vcombine.high %v2300_v49, %v2316_v50 }
 0x1de   : > { %v3476_v11 = vsel %vm3474_vm4, %v2525_v59, 0  ;;  %v3522_v12 = vsel %vm3474_vm4, %v2526_v60, 0 }
 0x1df   : > { %5648 = vmatpush3.bf16.msra.mxu1 %v3476_v11  ;;  %5654 = vmatpush3.bf16.msra.mxu0 %v3522_v12  ;;  %v2341_v22 = vrot.slane %v2333_v36, %v6267_v61  ;;  %v2373_v46 = vrot.slane %v2365_v4, %v6267_v61  ;;  %v2348_v40 = vrot.slane %v2334_v6, %v6267_v61 }
 0x1e0   : > { %5659 = vmatprep.subr.bf16.mxu1 %v5999_v8  ;;  %5665 = vmatprep.subr.bf16.mxu0 %v5999_v8  ;;  %v2380_v7 = vrot.slane %v2366_v16, %v6267_v61 }
 0x1e1   : > { %v6700_v35 = vcombine.low %v2341_v22, %v2373_v46  ;;  %v6702_v9 = vcombine.high %v2341_v22, %v2373_v46 }
 0x1e2   : > { %v6704_v10 = vcombine.low %v2348_v40, %v2380_v7  ;;  %v6706_v59 = vcombine.high %v2348_v40, %v2380_v7 }
 0x267   : > { %v6688_v2 = vpop.f32.mrb[4].mxu1  ;;  %v6690_v58 = vpop.f32.mrb[8].mxu0 }
 0x268   : > { %v5555_v1 = vpop.f32.mrb[5].mxu1  ;;  %v5561_v34 = vpop.f32.mrb[9].mxu0  ;;  %v3279_v14 = vsel %vm3278_vm5, %v6688_v2, -inf  ;;  %v3282_v3 = vsel %vm3278_vm5, %v6690_v58, -inf }
 0x269   : > { %v2585_v37 = vpop.f32.mrb[6].mxu1  ;;  %3280 = vmax.xlane.f32.xlu0 %v3279_v14  ;;  %3283 = vmax.xlane.f32.xlu1 %v3282_v3  ;;  %v2631_v5 = vpop.f32.mrb[10].mxu0 }
 0x26a   : > { %v5556_v17 = vpop.f32.mrb[7].mxu1  ;;  %v5562_v21 = vpop.f32.mrb[11].mxu0 }
 0x274   : > { %v6708_v60 = vpop.f32.mrb[8].mxu1  ;;  %v6710_v11 = vpop.f32.mrb[12].mxu0 }
 0x275   : > { %v5567_v12 = vpop.f32.mrb[9].mxu1  ;;  %v5573_v43 = vpop.f32.mrb[13].mxu0  ;;  %v3285_v13 = vsel %vm3278_vm5, %v6708_v60, -inf  ;;  %v3288_v29 = vsel %vm3278_vm5, %v6710_v11, -inf }
 0x276   : > { %v2677_v19 = vpop.f32.mrb[10].mxu1  ;;  %3286 = vmax.xlane.f32.xlu0 %v3285_v13  ;;  %v2723_v47 = vpop.f32.mrb[14].mxu0 }
 0x277   : > { %v5568_v28 = vpop.f32.mrb[11].mxu1  ;;  %v5574_v15 = vpop.f32.mrb[15].mxu0 }
 0x27a   : > { %3289 = vmax.xlane.f32.xlu0 %v3288_v29 }
 0x27d   : > { %v6716_v30 = vpop.f32.mrb[12].mxu1 }
 0x27e   : > { %v6718_v42 = vpop.f32.mrb[16].mxu0  ;;  %v5579_v31 = vpop.f32.mrb[13].mxu1  ;;  %v3291_v38 = vsel %vm3278_vm5, %v6716_v30, -inf }
 0x27f   : > { %v5585_v41 = vpop.f32.mrb[17].mxu0  ;;  %v2769_v63 = vpop.f32.mrb[14].mxu1  ;;  %3292 = vmax.xlane.f32.xlu1 %v3291_v38  ;;  %v3294_v23 = vsel %vm3278_vm5, %v6718_v42, -inf }
 0x280   : > { %3295 = vmax.xlane.f32.xlu0 %v3294_v23  ;;  %v2815_v24 = vpop.f32.mrb[18].mxu0  ;;  %v5580_v48 = vpop.f32.mrb[15].mxu1 }
 0x281   : > { %v5586_v25 = vpop.f32.mrb[19].mxu0 }
 0x287   : > { %v6724_v26 = vpop.f32.mrb[16].mxu1  ;;  %v6726_v32 = vpop.f32.mrb[20].mxu0 }
 0x288   : > { %v5591_v33 = vpop.f32.mrb[17].mxu1  ;;  %v5597_v51 = vpop.f32.mrb[21].mxu0  ;;  %v3297_v56 = vsel %vm3278_vm5, %v6724_v26, -inf  ;;  %v3300_v57 = vsel %vm3278_vm5, %v6726_v32, -inf }
 0x289   : > { %v2861_v0 = vpop.f32.mrb[18].mxu1  ;;  %3298 = vmax.xlane.f32.xlu1 %v3297_v56  ;;  %3301 = vmax.xlane.f32.xlu0 %v3300_v57  ;;  %v2907_v55 = vpop.f32.mrb[22].mxu0 }
 0x28a   : > { %v5592_v52 = vpop.f32.mrb[19].mxu1  ;;  %v5598_v53 = vpop.f32.mrb[23].mxu0 }
 0x291   : > { %v6732_v44 = vpop.f32.mrb[20].mxu1  ;;  %v6734_v62 = vpop.f32.mrb[24].mxu0 }
 0x292   : > { %v5603_v39 = vpop.f32.mrb[21].mxu1  ;;  %v3303_v49 = vsel %vm3278_vm5, %v6732_v44, -inf  ;;  %v5609_v50 = vpop.f32.mrb[25].mxu0  ;;  %v3306_v34 = vsel %vm3278_vm5, %v6734_v62, -inf }
 0x293   : > { %v2953_v1 = vpop.f32.mrb[22].mxu1  ;;  %3304 = vmax.xlane.f32.xlu1 %v3303_v49  ;;  %3307 = vmax.xlane.f32.xlu0 %v3306_v34  ;;  %v2999_v14 = vpop.f32.mrb[26].mxu0 }
 0x294   : > { %v5604_v3 = vpop.f32.mrb[23].mxu1  ;;  %v5610_v36 = vpop.f32.mrb[27].mxu0 }
 0x29b   : > { %v6740_v4 = vpop.f32.mrb[24].mxu1  ;;  %v6742_v37 = vpop.f32.mrb[28].mxu0 }
 0x29c   : > { %v5615_v5 = vpop.f32.mrb[25].mxu1  ;;  %v5621_v6 = vpop.f32.mrb[29].mxu0  ;;  %v3309_v16 = vsel %vm3278_vm5, %v6740_v4, -inf  ;;  %v3312_v17 = vsel %vm3278_vm5, %v6742_v37, -inf }
 0x29d   : > { %v3045_v21 = vpop.f32.mrb[26].mxu1  ;;  %3310 = vmax.xlane.f32.xlu1 %v3309_v16  ;;  %3313 = vmax.xlane.f32.xlu0 %v3312_v17  ;;  %v3091_v22 = vpop.f32.mrb[30].mxu0 }
 0x29e   : > { %v5616_v46 = vpop.f32.mrb[27].mxu1  ;;  %v5622_v40 = vpop.f32.mrb[31].mxu0 }
 0x2a3   : > { %v6748_v7 = vpop.f32.mrb[28].mxu1  ;;  %v6750_v12 = vpop.f32.mrb[32].mxu0 }
 0x2a4   : > { %v5627_v43 = vpop.f32.mrb[29].mxu1  ;;  %v5633_v13 = vpop.f32.mrb[33].mxu0  ;;  %v3315_v19 = vsel %vm3278_vm5, %v6748_v7, -inf  ;;  %v3318_v47 = vsel %vm3278_vm5, %v6750_v12, -inf }
 0x2a5   : > { %v3137_v28 = vpop.f32.mrb[30].mxu1  ;;  %3316 = vmax.xlane.f32.xlu1 %v3315_v19  ;;  %3319 = vmax.xlane.f32.xlu0 %v3318_v47  ;;  %v3183_v15 = vpop.f32.mrb[34].mxu0 }
 0x2a6   : > { %v5628_v29 = vpop.f32.mrb[31].mxu1  ;;  %v5634_v31 = vpop.f32.mrb[35].mxu0 }
 0x2ab   : > { %v6756_v38 = vpop.f32.mrb[32].mxu1  ;;  %v6758_v41 = vpop.f32.mrb[36].mxu0 }
 0x2ac   : > { %v5639_v63 = vpop.f32.mrb[33].mxu1  ;;  %v5645_v23 = vpop.f32.mrb[37].mxu0  ;;  %v3321_v24 = vsel %vm3278_vm5, %v6756_v38, -inf  ;;  %v3324_v48 = vsel %vm3278_vm5, %v6758_v41, -inf }
 0x2ad   : > { %v3229_v25 = vpop.f32.mrb[34].mxu1  ;;  %3322 = vmax.xlane.f32.xlu1 %v3321_v24  ;;  %3325 = vmax.xlane.f32.xlu0 %v3324_v48  ;;  %v3275_v33 = vpop.f32.mrb[38].mxu0 }
 0x2ae   : > { %v5640_v51 = vpop.f32.mrb[35].mxu1  ;;  %v5646_v56 = vpop.f32.mrb[39].mxu0 }
 0x2be   : > { %1947 = vrot.lane.b32.xlu1 %v6245_v45, %s6003_s22 }
 0x2c2   : > { %1953 = vrot.lane.b32.xlu1 %v6245_v45, %s6001_s3  ;;  %s7240_s3 = scalar_lea.vmem %s7231_s7, %s6097_s18 }
 0x2c3   : > { %1941 = vrot.lane.b32.xlu0 %v6245_v45, %s6002_s19 }
 0x2c6   : > { %1959 = vrot.lane.b32.xlu1 %v6245_v45, %s6004_s25 }
 0x2f6   : > { %v3281_v57 = vpop.xlane.xlu0 %3280  ;;  %v3284_v0 = vpop.xlane.xlu1 %3283 }
 0x2f7   : > { %v3327_v55 = vsub.f32 %v6688_v2, %v3281_v57  ;;  %v3328_v52 = vsub.f32 %v6690_v58, %v3284_v0 }
 0x2f9   : > { %v3343_v53 = vmul.f32 1.442695, %v3327_v55  ;;  %v3345_v39 = vmul.f32 1.442695, %v3328_v52 }
 0x2fb   : > { %5870 = vpow2.f32 %v3343_v53 }
 0x2fc   : > { %5872 = vpow2.f32 %v3345_v39 }
 0x303   : > { %v3287_v49 = vpop.xlane.xlu0 %3286 }
 0x304   : > { %v3329_v50 = vsub.f32 %v6708_v60, %v3287_v49 }
 0x305   : > { %v6775_v1 = vpop.eup %5870 }
 0x306   : > { %v3347_v34 = vmul.f32 1.442695, %v3329_v50  ;;  %v6777_v14 = vpop.eup %5872  ;;  %v3375_v36 = vsel %vm3278_vm5, %v6775_v1, 0.0 }
 0x307   : > { %v3290_v3 = vpop.xlane.xlu0 %3289  ;;  %3376 = vadd.xlane.f32.xlu1 %v3375_v36  ;;  %v3378_v58 = vsel %vm3278_vm5, %v6777_v14, 0.0 }
 0x308   : > { %5874 = vpow2.f32 %v3347_v34  ;;  %v3330_v2 = vsub.f32 %v6710_v11, %v3290_v3  ;;  %3379 = vadd.xlane.f32.xlu0 %v3378_v58 }
 0x30a   : > { %v3349_v5 = vmul.f32 1.442695, %v3330_v2 }
 0x30c   : > { %5876 = vpow2.f32 %v3349_v5  ;;  %v3293_v60 = vpop.xlane.xlu1 %3292 }
 0x30d   : > { %v3331_v6 = vsub.f32 %v6716_v30, %v3293_v60  ;;  %v3296_v16 = vpop.xlane.xlu0 %3295 }
 0x30e   : > { %v3332_v17 = vsub.f32 %v6718_v42, %v3296_v16 }
 0x30f   : > { %v3351_v21 = vmul.f32 1.442695, %v3331_v6 }
 0x310   : > { %v3353_v22 = vmul.f32 1.442695, %v3332_v17 }
 0x311   : > { %5878 = vpow2.f32 %v3351_v21 }
 0x312   : > { %v6786_v46 = vpop.eup %5874  ;;  %5880 = vpow2.f32 %v3353_v22 }
 0x313   : > { %v3381_v11 = vsel %vm3278_vm5, %v6786_v46, 0.0 }
 0x314   : > { %3382 = vadd.xlane.f32.xlu1 %v3381_v11 }
 0x316   : > { %v6790_v40 = vpop.eup %5876  ;;  %v3299_v43 = vpop.xlane.xlu1 %3298 }
 0x317   : > { %v3302_v13 = vpop.xlane.xlu0 %3301  ;;  %v3384_v30 = vsel %vm3278_vm5, %v6790_v40, 0.0  ;;  %v3333_v19 = vsub.f32 %v6724_v26, %v3299_v43 }
 0x318   : > { %v3334_v42 = vsub.f32 %v6726_v32, %v3302_v13  ;;  %3385 = vadd.xlane.f32.xlu0 %v3384_v30 }
 0x319   : > { %v3355_v47 = vmul.f32 1.442695, %v3333_v19 }
 0x31a   : > { %v3357_v28 = vmul.f32 1.442695, %v3334_v42 }
 0x31b   : > { %v6796_v15 = vpop.eup %5878  ;;  %5882 = vpow2.f32 %v3355_v47 }
 0x31c   : > { %v6798_v29 = vpop.eup %5880  ;;  %5884 = vpow2.f32 %v3357_v28  ;;  %v3387_v31 = vsel %vm3278_vm5, %v6796_v15, 0.0 }
 0x31d   : > { %v3390_v63 = vsel %vm3278_vm5, %v6798_v29, 0.0  ;;  %3388 = vadd.xlane.f32.xlu0 %v3387_v31 }
 0x31e   : > { %3391 = vadd.xlane.f32.xlu1 %v3390_v63 }
 0x320   : > { %v3305_v26 = vpop.xlane.xlu1 %3304  ;;  %v3308_v23 = vpop.xlane.xlu0 %3307 }
 0x321   : > { %v3335_v32 = vsub.f32 %v6732_v44, %v3305_v26  ;;  %v3336_v24 = vsub.f32 %v6734_v62, %v3308_v23 }
 0x323   : > { %v3359_v48 = vmul.f32 1.442695, %v3335_v32  ;;  %v3361_v25 = vmul.f32 1.442695, %v3336_v24 }
 0x325   : > { %v6806_v33 = vpop.eup %5882  ;;  %5886 = vpow2.f32 %v3359_v48 }
 0x326   : > { %v6808_v51 = vpop.eup %5884  ;;  %5888 = vpow2.f32 %v3361_v25  ;;  %v3393_v56 = vsel %vm3278_vm5, %v6806_v33, 0.0 }
 0x327   : > { %3394 = vadd.xlane.f32.xlu1 %v3393_v56  ;;  %v3396_v57 = vsel %vm3278_vm5, %v6808_v51, 0.0 }
 0x328   : > { %3397 = vadd.xlane.f32.xlu0 %v3396_v57 }
 0x32a   : > { %v3311_v44 = vpop.xlane.xlu1 %3310  ;;  %v3314_v0 = vpop.xlane.xlu0 %3313 }
 0x32b   : > { %v3337_v62 = vsub.f32 %v6740_v4, %v3311_v44  ;;  %v3338_v55 = vsub.f32 %v6742_v37, %v3314_v0 }
 0x32d   : > { %v3363_v52 = vmul.f32 1.442695, %v3337_v62  ;;  %v3365_v53 = vmul.f32 1.442695, %v3338_v55 }
 0x32f   : > { %v6816_v39 = vpop.eup %5886  ;;  %5890 = vpow2.f32 %v3363_v52 }
 0x330   : > { %v6818_v49 = vpop.eup %5888  ;;  %5892 = vpow2.f32 %v3365_v53  ;;  %v3399_v50 = vsel %vm3278_vm5, %v6816_v39, 0.0  ;;  %v2527_v53 = vpack.c.bf16 %v6672_v20, %v6672_v20 }
 0x331   : > { %v3402_v34 = vsel %vm3278_vm5, %v6818_v49, 0.0  ;;  %3400 = vadd.xlane.f32.xlu0 %v3399_v50 }
 0x332   : > { %v3317_v3 = vpop.xlane.xlu1 %3316  ;;  %v3320_v36 = vpop.xlane.xlu0 %3319  ;;  %3403 = vadd.xlane.f32.xlu1 %v3402_v34  ;;  %v3568_v20 = vsel %vm3474_vm4, %v2527_v53, 0  ;;  %v2531_v53 = vpack.c.bf16 %v6704_v10, %v6704_v10 }
 0x333   : > { %v3339_v4 = vsub.f32 %v6748_v7, %v3317_v3  ;;  %v3340_v37 = vsub.f32 %v6750_v12, %v3320_v36 }
 0x335   : > { %v3367_v2 = vmul.f32 1.442695, %v3339_v4  ;;  %v3369_v58 = vmul.f32 1.442695, %v3340_v37 }
 0x337   : > { %5894 = vpow2.f32 %v3367_v2 }
 0x338   : > { %5896 = vpow2.f32 %v3369_v58 }
 0x339   : > { %v6826_v5 = vpop.eup %5890 }
 0x33a   : > { %v6828_v60 = vpop.eup %5892  ;;  %v3405_v6 = vsel %vm3278_vm5, %v6826_v5, 0.0  ;;  %v3326_v22 = vpop.xlane.xlu0 %3325 }
 0x33b   : > { %v3408_v16 = vsel %vm3278_vm5, %v6828_v60, 0.0  ;;  %3406 = vadd.xlane.f32.xlu0 %v3405_v6  ;;  %v3342_v11 = vsub.f32 %v6758_v41, %v3326_v22  ;;  %v3323_v43 = vpop.xlane.xlu1 %3322 }
 0x33c   : > { %3409 = vadd.xlane.f32.xlu1 %v3408_v16  ;;  %v3341_v30 = vsub.f32 %v6756_v38, %v3323_v43 }
 0x33d   : > { %v3373_v13 = vmul.f32 1.442695, %v3342_v11 }
 0x33e   : > { %v3371_v19 = vmul.f32 1.442695, %v3341_v30  ;;  %v1942_v38 = vpop.permute.xlu0 %1941 }
 0x33f   : > { %5898 = vpow2.f32 %v3373_v13  ;;  %v1948_v41 = vpop.permute.xlu1 %1947 }
 0x340   : > { %5900 = vpow2.f32 %v3371_v19  ;;  %v2117_v25 = vcombine.low %v6245_v45, %v1948_v41  ;;  %v2118_v56 = vcombine.high %v6245_v45, %v1948_v41  ;;  %v2529_v19 = vpack.c.bf16 %v6700_v35, %v6700_v35 }
 0x341   : > { %v6834_v17 = vpop.eup %5894 }
 0x342   : > { %v3411_v7 = vsel %vm3278_vm5, %v6834_v17, 0.0  ;;  %v6838_v12 = vpop.eup %5896  ;;  %v2125_v50 = vrot.slane %v2117_v25, %v6262_v54  ;;  %v2132_v3 = vrot.slane %v2118_v56, %v6262_v54 }
 0x343   : > { %3412 = vadd.xlane.f32.xlu0 %v3411_v7  ;;  %v3414_v21 = vsel %vm3278_vm5, %v6838_v12, 0.0  ;;  %v1954_v63 = vpop.permute.xlu1 %1953 }
 0x344   : > { %v2133_v24 = vcombine.low %v1942_v38, %v1954_v63  ;;  %v2134_v48 = vcombine.high %v1942_v38, %v1954_v63 }
 0x346   : > { %v2141_v44 = vrot.slane %v2133_v24, %v6262_v54  ;;  %v2148_v62 = vrot.slane %v2134_v48, %v6262_v54  ;;  %v2530_v24 = vpack.c.bf16 %v6702_v9, %v6702_v9 }
 0x347   : > { %3415 = vadd.xlane.f32.xlu0 %v3414_v21  ;;  %v6858_v26 = vpop.permute.xlu1 %1959 }
 0x348   : > { %v2181_v4 = vcombine.low %v2125_v50, %v2141_v44  ;;  %v2182_v37 = vcombine.high %v2125_v50, %v2141_v44  ;;  %v2197_v58 = vcombine.low %v2132_v3, %v2148_v62  ;;  %v3706_v9 = vsel %vm3474_vm4, %v2530_v24, 0 }
 0x349   : > { %v6850_v42 = vpop.eup %5898 }
 0x34a   : > { %v3420_v47 = vsel %vm3278_vm5, %v6850_v42, 0.0  ;;  %v6854_v28 = vpop.eup %5900  ;;  %v2196_v16 = vrot.slane %v2182_v37, %v6267_v61  ;;  %v2205_v7 = vrot.slane %v2197_v58, %v6267_v61 }
 0x34b   : > { %v3417_v31 = vsel %vm3278_vm5, %v6854_v28, 0.0 }
 0x34d   : > { %1971 = vrot.lane.b32.xlu1 %v6245_v45, %s6006_s11 }
 0x351   : > { %1977 = vrot.lane.b32.xlu1 %v6245_v45, %s6007_s24 }
 0x35d   : > { %1965 = vrot.lane.b32.xlu0 %v6245_v45, %s6005_s28  ;;  %v2528_v45 = vpack.c.bf16 %v6674_v27, %v6674_v27  ;;  %v2189_v27 = vrot.slane %v2181_v4, %v6267_v61 }
 0x35f   : > { %v5362_v43 = vcombine.low %v2189_v27, %v2196_v16  ;;  %v5364_v13 = vcombine.high %v2189_v27, %v2196_v16 }
 0x361   : > { %v2413_v48 = vrot.slane %v5364_v13, %v6262_v54 }
 0x375   : > { %3421 = vadd.xlane.f32.xlu1 %v3420_v47 }
 0x37c   : > { %3418 = vadd.xlane.f32.xlu0 %v3417_v31 }
 0x394   : > { %v3377_v32 = vpop.xlane.xlu1 %3376 }
 0x395   : > { %5902 = vrcp.f32 %v3377_v32  ;;  %v3380_v23 = vpop.xlane.xlu0 %3379  ;;  %v2397_v32 = vrot.slane %v5362_v43, %v6262_v54 }
 0x396   : > { %5904 = vrcp.f32 %v3380_v23  ;;  %v3660_v23 = vsel %vm3474_vm4, %v2529_v19, 0 }
 0x397   : > { %v2453_v44 = vcombine.low %v2397_v32, %v2413_v48 }
 0x39f   : > { %v5903_v57 = vpop.eup %5902 }
 0x3a0   : > { %v5905_v0 = vpop.eup %5904  ;;  %v3439_v55 = vmul.f32 %v5903_v57, %v6775_v1  ;;  %v2198_v1 = vcombine.high %v2132_v3, %v2148_v62  ;;  %v2461_v3 = vrot.slane %v2453_v44, %v6267_v61 }
 0x3a1   : > { %v3383_v52 = vpop.xlane.xlu1 %3382  ;;  %v3440_v34 = vmul.f32 %v5905_v0, %v6777_v14  ;;  %v3614_v14 = vsel %vm3474_vm4, %v2528_v45, 0  ;;  %v2532_v45 = vpack.c.bf16 %v6706_v59, %v6706_v59 }
 0x3a2   : > { %5906 = vrcp.f32 %v3383_v52  ;;  %v3455_v36 = vpack.c.bf16 %v3439_v55, %v3439_v55  ;;  %v2212_v21 = vrot.slane %v2198_v1, %v6267_v61 }
 0x3a3   : > { %v3456_v2 = vpack.c.bf16 %v3440_v34, %v3440_v34  ;;  %v3798_v10 = vsel %vm3474_vm4, %v2532_v45, 0 }
 0x3a4   : > { %5650 = vmatmul.mubr.msk.bf16.vlgmr.msra.gmra.mrb[36].mxu1 %vm3278_vm5, %v3455_v36  ;;  %v5366_v47 = vcombine.low %v2205_v7, %v2212_v21  ;;  %v5368_v31 = vcombine.high %v2205_v7, %v2212_v21 }
 0x3a5   : > { %v3386_v6 = vpop.xlane.xlu0 %3385  ;;  %5660 = vmatpush3.bf16.msra.mxu1 %v3568_v20  ;;  %5656 = vmatmul.mubr.msk.bf16.vlgmr.msra.gmra.mrb[40].mxu0 %vm3278_vm5, %v3456_v2  ;;  %v2454_v2 = vcombine.high %v2397_v32, %v2413_v48 }
 0x3a6   : > { %5908 = vrcp.f32 %v3386_v6  ;;  %5666 = vmatpush3.bf16.msra.mxu0 %v3614_v14  ;;  %5661 = vmatprep.mubr.msk.bf16.mxu1 %vm6000_vm1, %v5999_v8  ;;  %v2429_v25 = vrot.slane %v5366_v47, %v6262_v54  ;;  %v2445_v35 = vrot.slane %v5368_v31, %v6262_v54 }
 0x3a7   : > { %5671 = vmatprep.subr.bf16.mxu1 %v5999_v8  ;;  %5667 = vmatprep.mubr.msk.bf16.mxu0 %vm6000_vm1, %v5999_v8 }
 0x3a8   : > { %5677 = vmatprep.subr.bf16.mxu0 %v5999_v8  ;;  %v2485_v0 = vcombine.low %v2429_v25, %v2445_v35  ;;  %v2486_v58 = vcombine.high %v2429_v25, %v2445_v35 }
 0x3aa   : > { %v3389_v22 = vpop.xlane.xlu0 %3388  ;;  %v2493_v36 = vrot.slane %v2485_v0, %v6267_v61 }
 0x3ab   : > { %v3392_v30 = vpop.xlane.xlu1 %3391  ;;  %5910 = vrcp.f32 %v3389_v22  ;;  %v2468_v22 = vrot.slane %v2454_v2, %v6267_v61 }
 0x3ac   : > { %v5907_v11 = vpop.eup %5906  ;;  %5912 = vrcp.f32 %v3392_v30  ;;  %v2517_v59 = vcombine.low %v2461_v3, %v2493_v36 }
 0x3ad   : > { %v3441_v41 = vmul.f32 %v5907_v11, %v6786_v46  ;;  %v2500_v11 = vrot.slane %v2486_v58, %v6267_v61 }
 0x3ae   : > { %v2533_v27 = vpack.c.bf16 %v2517_v59, %v2517_v59 }
 0x3af   : > { %v3457_v63 = vpack.c.bf16 %v3441_v41, %v3441_v41  ;;  %v2520_v30 = vcombine.high %v2468_v22, %v2500_v11 }
 0x3b0   : > { %v5909_v38 = vpop.eup %5908  ;;  %v3844_v13 = vsel %vm3474_vm4, %v2533_v27, 0 }
 0x3b1   : > { %v3442_v56 = vmul.f32 %v5909_v38, %v6790_v40  ;;  %5662 = vmatmul.mubr.msk.bf16.vlgmr.msra.gmra.mrb[40].mxu1 %vm3278_vm5, %v3457_v63 }
 0x3b2   : > { %5672 = vmatpush3.bf16.msra.mxu1 %v3660_v23  ;;  %5673 = vmatprep.mubr.msk.bf16.mxu1 %vm6000_vm1, %v5999_v8  ;;  %v2536_v23 = vpack.c.bf16 %v2520_v30, %v2520_v30 }
 0x3b3   : > { %v3458_v46 = vpack.c.bf16 %v3442_v56, %v3442_v56  ;;  %5683 = vmatprep.subr.bf16.mxu1 %v5999_v8 }
 0x3b4   : > { %v3395_v57 = vpop.xlane.xlu1 %3394  ;;  %v3982_v35 = vsel %vm3474_vm4, %v2536_v23, 0 }
 0x3b5   : > { %5668 = vmatmul.mubr.msk.bf16.vlgmr.msra.gmra.mrb[44].mxu0 %vm3278_vm5, %v3458_v46  ;;  %v5911_v62 = vpop.eup %5910  ;;  %5914 = vrcp.f32 %v3395_v57  ;;  %v3398_v55 = vpop.xlane.xlu0 %3397 }
 0x3b6   : > { %5678 = vmatpush3.bf16.msra.mxu0 %v3706_v9  ;;  %5679 = vmatprep.mubr.msk.bf16.mxu0 %vm6000_vm1, %v5999_v8  ;;  %v5913_v40 = vpop.eup %5912  ;;  %v3443_v52 = vmul.f32 %v5911_v62, %v6796_v15  ;;  %5916 = vrcp.f32 %v3398_v55  ;;  %v3752_v15 = vsel %vm3474_vm4, %v2531_v53, 0 }
 0x3b7   : > { %5689 = vmatprep.subr.bf16.mxu0 %v5999_v8  ;;  %v3444_v50 = vmul.f32 %v5913_v40, %v6798_v29  ;;  %v2518_v29 = vcombine.high %v2461_v3, %v2493_v36 }
 0x3b8   : > { %v3459_v34 = vpack.c.bf16 %v3443_v52, %v3443_v52 }
 0x3b9   : > { %v3460_v4 = vpack.c.bf16 %v3444_v50, %v3444_v50  ;;  %v2534_v7 = vpack.c.bf16 %v2518_v29, %v2518_v29 }
 0x3ba   : > { %5674 = vmatmul.mubr.msk.bf16.vlgmr.msra.gmra.mrb[44].mxu1 %vm3278_vm5, %v3459_v34 }
 0x3bb   : > { %5684 = vmatpush3.bf16.msra.mxu1 %v3752_v15  ;;  %5685 = vmatprep.mubr.msk.bf16.mxu1 %vm6000_vm1, %v5999_v8 }
 0x3bc   : > { %5695 = vmatprep.subr.bf16.mxu1 %v5999_v8 }
 0x3bd   : > { %5680 = vmatmul.mubr.msk.bf16.vlgmr.msra.gmra.mrb[48].mxu0 %vm3278_vm5, %v3460_v4 }
 0x3be   : > { %5690 = vmatpush3.bf16.msra.mxu0 %v3798_v10  ;;  %5691 = vmatprep.mubr.msk.bf16.mxu0 %vm6000_vm1, %v5999_v8  ;;  %v3401_v37 = vpop.xlane.xlu0 %3400 }
 0x3bf   : > { %5701 = vmatprep.subr.bf16.mxu0 %v5999_v8  ;;  %v5915_v1 = vpop.eup %5914  ;;  %v3404_v6 = vpop.xlane.xlu1 %3403  ;;  %5918 = vrcp.f32 %v3401_v37 }
 0x3c0   : > { %v5917_v20 = vpop.eup %5916  ;;  %v3445_v14 = vmul.f32 %v5915_v1, %v6806_v33  ;;  %5920 = vrcp.f32 %v3404_v6  ;;  %v3890_v33 = vsel %vm3474_vm4, %v2534_v7, 0 }
 0x3c1   : > { %v3446_v16 = vmul.f32 %v5917_v20, %v6808_v51  ;;  %v2519_v51 = vcombine.low %v2468_v22, %v2500_v11 }
 0x3c2   : > { %v3461_v21 = vpack.c.bf16 %v3445_v14, %v3445_v14 }
 0x3c3   : > { %v3462_v43 = vpack.c.bf16 %v3446_v16, %v3446_v16  ;;  %v2535_v38 = vpack.c.bf16 %v2519_v51, %v2519_v51 }
 0x3c4   : > { %5686 = vmatmul.mubr.msk.bf16.vlgmr.msra.gmra.mrb[48].mxu1 %vm3278_vm5, %v3461_v21 }
 0x3c5   : > { %5696 = vmatpush3.bf16.msra.mxu1 %v3844_v13  ;;  %5692 = vmatmul.mubr.msk.bf16.vlgmr.msra.gmra.mrb[52].mxu0 %vm3278_vm5, %v3462_v43  ;;  %v3936_v25 = vsel %vm3474_vm4, %v2535_v38, 0 }
 0x3c6   : > { %5702 = vmatpush3.bf16.msra.mxu0 %v3890_v33  ;;  %5697 = vmatprep.mubr.msk.bf16.mxu1 %vm6000_vm1, %v5999_v8 }
 0x3c7   : > { %5707 = vmatprep.subr.bf16.mxu1 %v5999_v8  ;;  %5703 = vmatprep.mubr.msk.bf16.mxu0 %vm6000_vm1, %v5999_v8 }
 0x3c8   : > { %v3407_v19 = vpop.xlane.xlu0 %3406  ;;  %5713 = vmatprep.subr.bf16.mxu0 %v5999_v8 }
 0x3c9   : > { %v5919_v47 = vpop.eup %5918  ;;  %v3410_v31 = vpop.xlane.xlu1 %3409  ;;  %5922 = vrcp.f32 %v3407_v19 }
 0x3ca   : > { %v5921_v41 = vpop.eup %5920  ;;  %v3447_v63 = vmul.f32 %v5919_v47, %v6816_v39  ;;  %5924 = vrcp.f32 %v3410_v31 }
 0x3cb   : > { %v3448_v32 = vmul.f32 %v5921_v41, %v6818_v49 }
 0x3cc   : > { %v3463_v24 = vpack.c.bf16 %v3447_v63, %v3447_v63 }
 0x3cd   : > { %v3464_v48 = vpack.c.bf16 %v3448_v32, %v3448_v32  ;;  %v1972_v39 = vpop.permute.xlu1 %1971 }
 0x3ce   : > { %5698 = vmatmul.mubr.msk.bf16.vlgmr.msra.gmra.mrb[52].mxu1 %vm3278_vm5, %v3463_v24  ;;  %v2149_v62 = vcombine.low %v6858_v26, %v1972_v39  ;;  %v2150_v55 = vcombine.high %v6858_v26, %v1972_v39 }
 0x3cf   : > { %5708 = vmatpush3.bf16.msra.mxu1 %v3936_v25  ;;  %5704 = vmatmul.mubr.msk.bf16.vlgmr.msra.gmra.mrb[56].mxu0 %vm3278_vm5, %v3464_v48 }
 0x3d0   : > { %v3413_v56 = vpop.xlane.xlu0 %3412  ;;  %5714 = vmatpush3.bf16.msra.mxu0 %v3982_v35  ;;  %5709 = vmatprep.mubr.msk.bf16.mxu1 %vm6000_vm1, %v5999_v8 }
 0x3d1   : > { %5715 = vmatprep.mubr.msk.bf16.mxu0 %vm6000_vm1, %v5999_v8  ;;  %5719 = vmatprep.subr.bf16.mxu1 %v5999_v8  ;;  %v1978_v52 = vpop.permute.xlu1 %1977  ;;  %5926 = vrcp.f32 %v3413_v56 }
 0x3d2   : > { %5725 = vmatprep.subr.bf16.mxu0 %v5999_v8 }
 0x3d3   : > { %v5923_v49 = vpop.eup %5922 }
 0x3d4   : > { %v5925_v46 = vpop.eup %5924  ;;  %v3449_v57 = vmul.f32 %v5923_v49, %v6826_v5  ;;  %v3416_v9 = vpop.xlane.xlu0 %3415  ;;  %v2157_v5 = vrot.slane %v2149_v62, %v6262_v54 }
 0x3d5   : > { %v3450_v44 = vmul.f32 %v5925_v46, %v6828_v60  ;;  %v2164_v60 = vrot.slane %v2150_v55, %v6262_v54  ;;  %5928 = vrcp.f32 %v3416_v9 }
 0x3d6   : > { %v3465_v0 = vpack.c.bf16 %v3449_v57, %v3449_v57 }
 0x3d7   : > { %v3466_v40 = vpack.c.bf16 %v3450_v44, %v3450_v44 }
 0x3d8   : > { %5710 = vmatmul.mubr.msk.bf16.vlgmr.msra.gmra.mrb[56].mxu1 %vm3278_vm5, %v3465_v0  ;;  %v1966_v53 = vpop.permute.xlu0 %1965 }
 0x3d9   : > { %v2165_v50 = vcombine.low %v1966_v53, %v1978_v52  ;;  %v2166_v34 = vcombine.high %v1966_v53, %v1978_v52  ;;  %5716 = vmatmul.mubr.msk.bf16.vlgmr.msra.gmra.mrb[60].mxu0 %vm3278_vm5, %v3466_v40  ;;  %5721 = vmatprep.mubr.msk.bf16.mxu1 %vm6000_vm1, %v5999_v8 }
 0x3da   : > { %5727 = vmatprep.mubr.msk.bf16.mxu0 %vm6000_vm1, %v5999_v8 }
 0x3db   : > { %v2173_v26 = vrot.slane %v2165_v50, %v6262_v54  ;;  %v2180_v45 = vrot.slane %v2166_v34, %v6262_v54  ;;  %v5927_v43 = vpop.eup %5926 }
 0x3dc   : > { %v3451_v38 = vmul.f32 %v5927_v43, %v6834_v17 }
 0x3dd   : > { %v2213_v3 = vcombine.low %v2157_v5, %v2173_v26  ;;  %v2214_v36 = vcombine.high %v2157_v5, %v2173_v26  ;;  %v2229_v15 = vcombine.low %v2164_v60, %v2180_v45  ;;  %v2230_v4 = vcombine.high %v2164_v60, %v2180_v45 }
 0x3de   : > { %v3467_v39 = vpack.c.bf16 %v3451_v38, %v3451_v38 }
 0x3df   : > { %v2221_v10 = vrot.slane %v2213_v3, %v6267_v61  ;;  %v2228_v59 = vrot.slane %v2214_v36, %v6267_v61  ;;  %v2237_v29 = vrot.slane %v2229_v15, %v6267_v61  ;;  %v2244_v37 = vrot.slane %v2230_v4, %v6267_v61  ;;  %v5929_v19 = vpop.eup %5928 }
 0x3e0   : > { %v3452_v32 = vmul.f32 %v5929_v19, %v6838_v12 }
 0x3e1   : > { %v5363_v2 = vcombine.low %v2221_v10, %v2228_v59  ;;  %v5365_v58 = vcombine.high %v2221_v10, %v2228_v59  ;;  %v5367_v1 = vcombine.low %v2237_v29, %v2244_v37  ;;  %v5369_v6 = vcombine.high %v2237_v29, %v2244_v37 }
 0x3e2   : > { %v3468_v49 = vpack.c.bf16 %v3452_v32, %v3452_v32 }
 0x3e3   : > { %v2404_v20 = vrot.slane %v5363_v2, %v6262_v54  ;;  %v2420_v14 = vrot.slane %v5365_v58, %v6262_v54  ;;  %v2436_v27 = vrot.slane %v5367_v1, %v6262_v54  ;;  %v2452_v16 = vrot.slane %v5369_v6, %v6262_v54 }
 0x3e5   : > { %v2469_v7 = vcombine.low %v2404_v20, %v2420_v14  ;;  %v2501_v21 = vcombine.low %v2436_v27, %v2452_v16  ;;  %v2470_v22 = vcombine.high %v2404_v20, %v2420_v14  ;;  %v2502_v11 = vcombine.high %v2436_v27, %v2452_v16 }
 0x3e7   : > { %v2477_v13 = vrot.slane %v2469_v7, %v6267_v61  ;;  %v2509_v33 = vrot.slane %v2501_v21, %v6267_v61  ;;  %v2484_v51 = vrot.slane %v2470_v22, %v6267_v61  ;;  %v2516_v30 = vrot.slane %v2502_v11, %v6267_v61 }
 0x3e9   : > { %v2521_v47 = vcombine.low %v2477_v13, %v2509_v33  ;;  %v2522_v31 = vcombine.high %v2477_v13, %v2509_v33  ;;  %v2523_v41 = vcombine.low %v2484_v51, %v2516_v30  ;;  %v2524_v63 = vcombine.high %v2484_v51, %v2516_v30 }
 0x3eb   : > { %v2537_v23 = vpack.c.bf16 %v2521_v47, %v2521_v47  ;;  %v2538_v24 = vpack.c.bf16 %v2522_v31, %v2522_v31  ;;  %v2539_v35 = vpack.c.bf16 %v2523_v41, %v2523_v41  ;;  %v2540_v56 = vpack.c.bf16 %v2524_v63, %v2524_v63 }
 0x3ed   : > { %v4028_v48 = vsel %vm3474_vm4, %v2537_v23, 0  ;;  %v4074_v25 = vsel %vm3474_vm4, %v2538_v24, 0  ;;  %v4120_v17 = vsel %vm3474_vm4, %v2539_v35, 0  ;;  %v4166_v12 = vsel %vm3474_vm4, %v2540_v56, 0 }
 0x3ee   : > { %5720 = vmatpush3.bf16.msra.mxu1 %v4028_v48  ;;  %5726 = vmatpush3.bf16.msra.mxu0 %v4074_v25 }
 0x3ef   : > { %5731 = vmatprep.subr.bf16.mxu1 %v5999_v8  ;;  %5737 = vmatprep.subr.bf16.mxu0 %v5999_v8 }
 0x3f1   : > { %5722 = vmatmul.mubr.msk.bf16.vlgmr.msra.gmra.mrb[60].mxu1 %vm3278_vm5, %v3467_v39  ;;  %5728 = vmatmul.mubr.msk.bf16.vlgmr.msra.gmra.mrb[64].mxu0 %vm3278_vm5, %v3468_v49 }
 0x3f2   : > { %5732 = vmatpush3.bf16.msra.mxu1 %v4120_v17  ;;  %5738 = vmatpush3.bf16.msra.mxu0 %v4166_v12 }
 0x3f3   : > { %5739 = vmatprep.mubr.msk.bf16.mxu0 %vm6000_vm1, %v5999_v8  ;;  %5733 = vmatprep.mubr.msk.bf16.mxu1 %vm6000_vm1, %v5999_v8 }
 0x3f4   : > { %5743 = vmatprep.subr.bf16.mxu1 %v5999_v8  ;;  %5751 = vmatprep.subr.bf16.mxu0 %v5999_v8 }
 0x402   : > { %v3422_v46 = vpop.xlane.xlu1 %3421 }
 0x403   : > { %5930 = vrcp.f32 %v3422_v46 }
 0x409   : > { %v3419_v57 = vpop.xlane.xlu0 %3418 }
 0x40a   : > { %5932 = vrcp.f32 %v3419_v57 }
 0x40d   : > { %v5931_v9 = vpop.eup %5930 }
 0x40e   : > { %v3454_v44 = vmul.f32 %v5931_v9, %v6850_v42 }
 0x410   : > { %v3470_v0 = vpack.c.bf16 %v3454_v44, %v3454_v44 }
 0x412   : > { %5740 = vmatmul.mubr.msk.bf16.vlgmr.msra.gmra.mrb[68].mxu0 %vm3278_vm5, %v3470_v0 }
 0x413   : > { %5755 = vmatprep.mubr.msk.bf16.mxu0 %vm6000_vm1, %v5999_v8 }
 0x414   : > { %v5933_v62 = vpop.eup %5932 }
 0x415   : > { %v3453_v55 = vmul.f32 %v5933_v62, %v6854_v28 }
 0x417   : > { %v3469_v40 = vpack.c.bf16 %v3453_v55, %v3453_v55 }
 0x419   : > { %5734 = vmatmul.mubr.msk.bf16.vlgmr.msra.gmra.mrb[64].mxu1 %vm3278_vm5, %v3469_v40 }
 0x41a   : > { %5747 = vmatprep.mubr.msk.bf16.mxu1 %vm6000_vm1, %v5999_v8 }
 0x477   : > { %v3512_v52 = vpop.f32.mrb[36].mxu1 }
 0x478   : > { %v3558_v53 = vpop.f32.mrb[40].mxu0  ;;  %v5651_v50 = vpop.f32.mrb[37].mxu1 }
 0x479   : > { %v5657_v34 = vpop.f32.mrb[41].mxu0  ;;  %v3515_v42 = vpop.f32.mrb[38].mxu1 }
 0x47a   : > { %v3561_v5 = vpop.f32.mrb[42].mxu0  ;;  %v5652_v60 = vpop.f32.mrb[39].mxu1 }
 0x47b   : > { %v5658_v26 = vpop.f32.mrb[43].mxu0 }
 0x484   : > { %v3604_v45 = vpop.f32.mrb[40].mxu1 }
 0x485   : > { %v4208_v3 = vcombine.low %v3512_v52, %v3604_v45  ;;  %v4209_v36 = vcombine.high %v3512_v52, %v3604_v45  ;;  %v5663_v15 = vpop.f32.mrb[41].mxu1 }
 0x486   : > { %v3607_v4 = vpop.f32.mrb[42].mxu1 }
 0x487   : > { %v5664_v28 = vpop.f32.mrb[43].mxu1  ;;  %v4216_v58 = vrot.slane %v4208_v3, %v6262_v54  ;;  %v4223_v1 = vrot.slane %v4209_v36, %v6262_v54 }
 0x488   : > { %v3650_v10 = vpop.f32.mrb[44].mxu0 }
 0x489   : > { %v4224_v59 = vcombine.low %v3558_v53, %v3650_v10  ;;  %v4225_v29 = vcombine.high %v3558_v53, %v3650_v10  ;;  %v5669_v37 = vpop.f32.mrb[45].mxu0 }
 0x48a   : > { %v3653_v2 = vpop.f32.mrb[46].mxu0 }
 0x48b   : > { %v4232_v6 = vrot.slane %v4224_v59, %v6262_v54  ;;  %v4239_v20 = vrot.slane %v4225_v29, %v6262_v54  ;;  %v5670_v14 = vpop.f32.mrb[47].mxu0 }
 0x48d   : > { %v4272_v27 = vcombine.low %v4216_v58, %v4232_v6  ;;  %v4273_v16 = vcombine.high %v4216_v58, %v4232_v6  ;;  %v4288_v7 = vcombine.low %v4223_v1, %v4239_v20  ;;  %v4289_v21 = vcombine.high %v4223_v1, %v4239_v20  ;;  %v3696_v22 = vpop.f32.mrb[44].mxu1 }
 0x48e   : > { %v5675_v51 = vpop.f32.mrb[45].mxu1 }
 0x48f   : > { %v4280_v11 = vrot.slane %v4272_v27, %v6267_v61  ;;  %v4287_v43 = vrot.slane %v4273_v16, %v6267_v61  ;;  %v4296_v13 = vrot.slane %v4288_v7, %v6267_v61  ;;  %v4303_v33 = vrot.slane %v4289_v21, %v6267_v61  ;;  %v3699_v30 = vpop.f32.mrb[46].mxu1 }
 0x490   : > { %v3742_v19 = vpop.f32.mrb[48].mxu0  ;;  %v5676_v38 = vpop.f32.mrb[47].mxu1 }
 0x491   : > { %v5402_v47 = vcombine.low %v4280_v11, %v4287_v43  ;;  %v5404_v31 = vcombine.high %v4280_v11, %v4287_v43  ;;  %v5406_v41 = vcombine.low %v4296_v13, %v4303_v33  ;;  %v5408_v63 = vcombine.high %v4296_v13, %v4303_v33  ;;  %v5681_v32 = vpop.f32.mrb[49].mxu0 }
 0x492   : > { %v3745_v23 = vpop.f32.mrb[50].mxu0 }
 0x493   : > { %v4488_v24 = vrot.slane %v5402_v47, %v6262_v54  ;;  %v4504_v48 = vrot.slane %v5404_v31, %v6262_v54  ;;  %v4520_v25 = vrot.slane %v5406_v41, %v6262_v54  ;;  %v4536_v35 = vrot.slane %v5408_v63, %v6262_v54  ;;  %v5682_v56 = vpop.f32.mrb[51].mxu0 }
 0x495   : > { %v4545_v39 = vcombine.high %v4488_v24, %v4504_v48  ;;  %v4577_v49 = vcombine.high %v4520_v25, %v4536_v35  ;;  %v4544_v17 = vcombine.low %v4488_v24, %v4504_v48  ;;  %v4576_v12 = vcombine.low %v4520_v25, %v4536_v35 }
 0x497   : > { %v7013_v46 = vrot.slane %v4545_v39, %v6267_v61  ;;  %v7016_v57 = vrot.slane %v4577_v49, %v6267_v61  ;;  %v7019_v9 = vrot.slane %v4544_v17, %v6267_v61  ;;  %v7022_v44 = vrot.slane %v4576_v12, %v6267_v61  ;;  %v3788_v0 = vpop.f32.mrb[48].mxu1 }
 0x498   : > { %v4240_v62 = vcombine.low %v3696_v22, %v3788_v0  ;;  %v4241_v55 = vcombine.high %v3696_v22, %v3788_v0  ;;  %v5687_v40 = vpop.f32.mrb[49].mxu1  ;;  %v3834_v52 = vpop.f32.mrb[52].mxu0 }
 0x499   : > { %v4610_v53 = vcombine.low %v7013_v46, %v7016_v57  ;;  %v4608_v50 = vcombine.low %v7019_v9, %v7022_v44  ;;  %v3791_v34 = vpop.f32.mrb[50].mxu1  ;;  %v4256_v42 = vcombine.low %v3742_v19, %v3834_v52  ;;  %v4257_v5 = vcombine.high %v3742_v19, %v3834_v52  ;;  %v5693_v60 = vpop.f32.mrb[53].mxu0 }
 0x49a   : > { %v4609_v26 = vcombine.high %v7019_v9, %v7022_v44  ;;  %v4611_v45 = vcombine.high %v7013_v46, %v7016_v57  ;;  %v5688_v3 = vpop.f32.mrb[51].mxu1  ;;  %v3837_v36 = vpop.f32.mrb[54].mxu0  ;;  %v4248_v15 = vrot.slane %v4240_v62, %v6262_v54  ;;  %v4255_v4 = vrot.slane %v4241_v55, %v6262_v54 }
 0x49b   : > { %v4264_v28 = vrot.slane %v4256_v42, %v6262_v54  ;;  %v4271_v10 = vrot.slane %v4257_v5, %v6262_v54  ;;  %v5694_v59 = vpop.f32.mrb[55].mxu0 }
 0x49d   : > { %v4304_v29 = vcombine.low %v4248_v15, %v4264_v28  ;;  %v4305_v37 = vcombine.high %v4248_v15, %v4264_v28  ;;  %v4320_v2 = vcombine.low %v4255_v4, %v4271_v10  ;;  %v4321_v58 = vcombine.high %v4255_v4, %v4271_v10 }
 0x49f   : > { %v4312_v1 = vrot.slane %v4304_v29, %v6267_v61  ;;  %v4319_v6 = vrot.slane %v4305_v37, %v6267_v61  ;;  %v4328_v20 = vrot.slane %v4320_v2, %v6267_v61  ;;  %v4335_v14 = vrot.slane %v4321_v58, %v6267_v61 }
 0x4a1   : > { %v5403_v27 = vcombine.low %v4312_v1, %v4319_v6  ;;  %v5405_v16 = vcombine.high %v4312_v1, %v4319_v6  ;;  %v5407_v7 = vcombine.low %v4328_v20, %v4335_v14  ;;  %v5409_v21 = vcombine.high %v4328_v20, %v4335_v14  ;;  %v3880_v22 = vpop.f32.mrb[52].mxu1 }
 0x4a2   : > { %v5699_v11 = vpop.f32.mrb[53].mxu1  ;;  %v3926_v43 = vpop.f32.mrb[56].mxu0 }
 0x4a3   : > { %v4495_v13 = vrot.slane %v5403_v27, %v6262_v54  ;;  %v4511_v33 = vrot.slane %v5405_v16, %v6262_v54  ;;  %v4527_v51 = vrot.slane %v5407_v7, %v6262_v54  ;;  %v4543_v30 = vrot.slane %v5409_v21, %v6262_v54  ;;  %v3883_v19 = vpop.f32.mrb[54].mxu1  ;;  %v5705_v47 = vpop.f32.mrb[57].mxu0 }
 0x4a4   : > { %v5700_v31 = vpop.f32.mrb[55].mxu1  ;;  %v3929_v41 = vpop.f32.mrb[58].mxu0 }
 0x4a5   : > { %v5706_v63 = vpop.f32.mrb[59].mxu0  ;;  %v4560_v38 = vcombine.low %v4495_v13, %v4511_v33  ;;  %v4592_v32 = vcombine.low %v4527_v51, %v4543_v30  ;;  %v4561_v23 = vcombine.high %v4495_v13, %v4511_v33  ;;  %v4593_v24 = vcombine.high %v4527_v51, %v4543_v30 }
 0x4a7   : > { %v7045_v48 = vrot.slane %v4560_v38, %v6267_v61  ;;  %v7048_v25 = vrot.slane %v4592_v32, %v6267_v61  ;;  %v7051_v35 = vrot.slane %v4561_v23, %v6267_v61  ;;  %v7054_v56 = vrot.slane %v4593_v24, %v6267_v61 }
 0x4a9   : > { %v4613_v39 = vcombine.high %v7045_v48, %v7048_v25  ;;  %v4612_v49 = vcombine.low %v7045_v48, %v7048_v25  ;;  %v4615_v17 = vcombine.high %v7051_v35, %v7054_v56  ;;  %v4614_v12 = vcombine.low %v7051_v35, %v7054_v56 }
 0x4ab   : > { %v3972_v0 = vpop.f32.mrb[56].mxu1 }
 0x4ac   : > { %v4344_v62 = vcombine.low %v3880_v22, %v3972_v0  ;;  %v4345_v55 = vcombine.high %v3880_v22, %v3972_v0  ;;  %v5711_v40 = vpop.f32.mrb[57].mxu1  ;;  %v4018_v52 = vpop.f32.mrb[60].mxu0 }
 0x4ad   : > { %v3975_v34 = vpop.f32.mrb[58].mxu1  ;;  %v4360_v42 = vcombine.low %v3926_v43, %v4018_v52  ;;  %v4361_v5 = vcombine.high %v3926_v43, %v4018_v52  ;;  %v5717_v60 = vpop.f32.mrb[61].mxu0 }
 0x4ae   : > { %v5712_v3 = vpop.f32.mrb[59].mxu1  ;;  %v4021_v36 = vpop.f32.mrb[62].mxu0  ;;  %v4352_v15 = vrot.slane %v4344_v62, %v6262_v54  ;;  %v4359_v4 = vrot.slane %v4345_v55, %v6262_v54 }
 0x4af   : > { %v4368_v28 = vrot.slane %v4360_v42, %v6262_v54  ;;  %v4375_v10 = vrot.slane %v4361_v5, %v6262_v54  ;;  %v5718_v59 = vpop.f32.mrb[63].mxu0 }
 0x4b1   : > { %v4408_v29 = vcombine.low %v4352_v15, %v4368_v28  ;;  %v4409_v37 = vcombine.high %v4352_v15, %v4368_v28  ;;  %v4424_v2 = vcombine.low %v4359_v4, %v4375_v10  ;;  %v4425_v58 = vcombine.high %v4359_v4, %v4375_v10 }
 0x4b3   : > { %v4416_v1 = vrot.slane %v4408_v29, %v6267_v61  ;;  %v4423_v6 = vrot.slane %v4409_v37, %v6267_v61  ;;  %v4432_v20 = vrot.slane %v4424_v2, %v6267_v61  ;;  %v4439_v14 = vrot.slane %v4425_v58, %v6267_v61 }
 0x4b5   : > { %v5410_v27 = vcombine.low %v4416_v1, %v4423_v6  ;;  %v5412_v16 = vcombine.high %v4416_v1, %v4423_v6  ;;  %v5414_v7 = vcombine.low %v4432_v20, %v4439_v14  ;;  %v5416_v21 = vcombine.high %v4432_v20, %v4439_v14 }
 0x4b7   : > { %v4624_v22 = vrot.slane %v5410_v27, %v6262_v54  ;;  %v4640_v11 = vrot.slane %v5412_v16, %v6262_v54  ;;  %v4656_v43 = vrot.slane %v5414_v7, %v6262_v54  ;;  %v4672_v13 = vrot.slane %v5416_v21, %v6262_v54 }
 0x4b9   : > { %v4681_v33 = vcombine.high %v4624_v22, %v4640_v11  ;;  %v4713_v51 = vcombine.high %v4656_v43, %v4672_v13  ;;  %v4680_v30 = vcombine.low %v4624_v22, %v4640_v11  ;;  %v4712_v19 = vcombine.low %v4656_v43, %v4672_v13 }
 0x4bb   : > { %v4695_v47 = vrot.slane %v4681_v33, %v6267_v61  ;;  %v4727_v31 = vrot.slane %v4713_v51, %v6267_v61  ;;  %v7079_v41 = vrot.slane %v4680_v30, %v6267_v61  ;;  %v7082_v63 = vrot.slane %v4712_v19, %v6267_v61  ;;  %v5862_v30 = vld [vmem:[%s6120_s17] sm:$0xff]  }
 0x4bc   : > { %5744 = vmatpush3.bf16.msra.mxu1 %v5862_v30 }
 0x4bd   : > { %v4746_v38 = vcombine.low %v4695_v47, %v4727_v31  ;;  %v4745_v32 = vcombine.high %v7079_v41, %v7082_v63  ;;  %v4744_v23 = vcombine.low %v7079_v41, %v7082_v63  ;;  %v4747_v24 = vcombine.high %v4695_v47, %v4727_v31  ;;  %5745 = vmatprep.subr.bf16.mxu1 %v5999_v8 }
 0x4bf   : > { %v5826_v0 = vpack.i.bf16 %v4746_v38, %v4610_v53  ;;  %v5821_v62 = vpack.i.bf16 %v4745_v32, %v4609_v26  ;;  %v5831_v55 = vpack.i.bf16 %v4747_v24, %v4611_v45 }
 0x4c1   : > { %5827 = vrot.lane.b32.xlu1 %v5826_v0, %s6010_s27  ;;  %5822 = vrot.lane.b32.xlu0 %v5821_v62, %s6011_s29 }
 0x4c4   : > { %v4064_v40 = vpop.f32.mrb[60].mxu1  ;;  %v4110_v52 = vpop.f32.mrb[64].mxu0 }
 0x4c5   : > { %v5723_v34 = vpop.f32.mrb[61].mxu1  ;;  %v5729_v42 = vpop.f32.mrb[65].mxu0  ;;  %5832 = vrot.lane.b32.xlu0 %v5831_v55, %s6012_s16 }
 0x4c6   : > { %v4067_v53 = vpop.f32.mrb[62].mxu1  ;;  %v4113_v5 = vpop.f32.mrb[66].mxu0  ;;  %v5863_v42 = vld [vmem:[%s6120_s17 + $0x8] sm:$0xff]   ;;  %s6013_s17 = smov 20  }
 0x4c7   : > { %v5724_v60 = vpop.f32.mrb[63].mxu1  ;;  %v5730_v3 = vpop.f32.mrb[67].mxu0  ;;  %5746 = vmatpush3.bf16.msra.mxu1 %v5863_v42 }
 0x4c8   : > { %5759 = vmatprep.subr.bf16.mxu1 %v5999_v8 }
 0x4e5   : > { %v4202_v26 = vpop.f32.mrb[68].mxu0 }
 0x4e6   : > { %v4392_v36 = vcombine.low %v4110_v52, %v4202_v26  ;;  %v4393_v15 = vcombine.high %v4110_v52, %v4202_v26  ;;  %v5741_v46 = vpop.f32.mrb[69].mxu0 }
 0x4e7   : > { %v4205_v57 = vpop.f32.mrb[70].mxu0 }
 0x4e8   : > { %v5742_v45 = vpop.f32.mrb[71].mxu0  ;;  %v4400_v37 = vrot.slane %v4392_v36, %v6262_v54  ;;  %v4407_v2 = vrot.slane %v4393_v15, %v6262_v54 }
 0x4ec   : > { %v4156_v4 = vpop.f32.mrb[64].mxu1 }
 0x4ed   : > { %v4376_v28 = vcombine.low %v4064_v40, %v4156_v4  ;;  %v4377_v10 = vcombine.high %v4064_v40, %v4156_v4  ;;  %v5735_v59 = vpop.f32.mrb[65].mxu1 }
 0x4ee   : > { %v4159_v29 = vpop.f32.mrb[66].mxu1 }
 0x4ef   : > { %v4384_v58 = vrot.slane %v4376_v28, %v6262_v54  ;;  %v4391_v1 = vrot.slane %v4377_v10, %v6262_v54  ;;  %v5736_v6 = vpop.f32.mrb[67].mxu1 }
 0x4f1   : > { %v4440_v20 = vcombine.low %v4384_v58, %v4400_v37  ;;  %v4441_v14 = vcombine.high %v4384_v58, %v4400_v37  ;;  %v4456_v27 = vcombine.low %v4391_v1, %v4407_v2  ;;  %v4457_v16 = vcombine.high %v4391_v1, %v4407_v2 }
 0x4f3   : > { %v4448_v7 = vrot.slane %v4440_v20, %v6267_v61  ;;  %v4455_v21 = vrot.slane %v4441_v14, %v6267_v61  ;;  %v4464_v22 = vrot.slane %v4456_v27, %v6267_v61  ;;  %v4471_v11 = vrot.slane %v4457_v16, %v6267_v61 }
 0x4f5   : > { %v5411_v43 = vcombine.low %v4448_v7, %v4455_v21  ;;  %v5413_v13 = vcombine.high %v4448_v7, %v4455_v21  ;;  %v5415_v33 = vcombine.low %v4464_v22, %v4471_v11  ;;  %v5417_v51 = vcombine.high %v4464_v22, %v4471_v11 }
 0x4f7   : > { %v4631_v19 = vrot.slane %v5411_v43, %v6262_v54  ;;  %v4647_v47 = vrot.slane %v5413_v13, %v6262_v54  ;;  %v4663_v31 = vrot.slane %v5415_v33, %v6262_v54  ;;  %v4679_v38 = vrot.slane %v5417_v51, %v6262_v54  ;;  %v7145_v13 = vld [vmem:[%s6136_s30] sm:$0xff] }
 0x4f8   : > { %v4834_v43 = vsub.s32 3, %v6173_v18 }
 0x4f9   : > { %v4696_v32 = vcombine.low %v4631_v19, %v4647_v47  ;;  %v4728_v24 = vcombine.low %v4663_v31, %v4679_v38  ;;  %v4697_v0 = vcombine.high %v4631_v19, %v4647_v47  ;;  %v4729_v62 = vcombine.high %v4663_v31, %v4679_v38 }
 0x4fa   : > { %v4835_v33 = vrot.slane %v7145_v13, %v4834_v43 }
 0x4fb   : > { %v4704_v55 = vrot.slane %v4696_v32, %v6267_v61  ;;  %v4736_v40 = vrot.slane %v4728_v24, %v6267_v61  ;;  %v4711_v52 = vrot.slane %v4697_v0, %v6267_v61  ;;  %v4743_v34 = vrot.slane %v4729_v62, %v6267_v61  ;;  %v5943_v32 = vld [vmem:[#allocation2] sm:$0xff]  ;;  %v5944_v62 = vld [vmem:[#allocation2 + $0x8] sm:$0xff] }
 0x4fd   : > { %v4749_v53 = vcombine.high %v4704_v55, %v4736_v40  ;;  %v4748_v5 = vcombine.low %v4704_v55, %v4736_v40  ;;  %v4751_v60 = vcombine.high %v4711_v52, %v4743_v34  ;;  %v4750_v54 = vcombine.low %v4711_v52, %v4743_v34 }
 0x4ff   : > { %v5841_v3 = vpack.i.bf16 %v4749_v53, %v4613_v39  ;;  %v5836_v26 = vpack.i.bf16 %v4748_v5, %v4612_v49  ;;  %v5851_v36 = vpack.i.bf16 %v4751_v60, %v4615_v17  ;;  %v5846_v61 = vpack.i.bf16 %v4750_v54, %v4614_v12 }
 0x501   : > { %5842 = vrot.lane.b32.xlu0 %v5841_v3, %s6013_s17  ;;  %5837 = vrot.lane.b32.xlu1 %v5836_v26, %s6014_s12 }
 0x505   : > { %5852 = vrot.lane.b32.xlu0 %v5851_v36, %s6015_s20  ;;  %5847 = vrot.lane.b32.xlu1 %v5846_v61, %s6016_s21  ;;  %v5864_v61 = vld [vmem:[%s6125_s23] sm:$0xff]  }
 0x506   : > { %5752 = vmatpush3.bf16.msra.mxu0 %v5864_v61 }
 0x507   : > { %5753 = vmatprep.subr.bf16.mxu0 %v5999_v8 }
 0x533   : > { %v5823_v48 = vpop.permute.xlu0 %5822  ;;  %v5828_v25 = vpop.permute.xlu1 %5827 }
 0x534   : > { %v5825_v39 = vunpack.i.h.bf16 %v5823_v48  ;;  %v5824_v49 = vunpack.i.l.bf16 %v5823_v48  ;;  %v5830_v17 = vunpack.i.h.bf16 %v5828_v25  ;;  %v5829_v46 = vunpack.i.l.bf16 %v5828_v25  ;;  %v5865_v48 = vld [vmem:[%s6125_s23 + $0x8] sm:$0xff]   ;;  %v5866_v25 = vld [vmem:[%s6131_s26] sm:$0xff]  }
 0x535   : > { %5754 = vmatpush3.bf16.msra.mxu0 %v5865_v48  ;;  %v5115_v48 = vsub.s32 7, %v6173_v18 }
 0x536   : > { %v4808_v35 = vsel %vm2541_vm3, %v4608_v50, %v5824_v49  ;;  %v4809_v56 = vsel %vm2541_vm3, %v4744_v23, %v5825_v39  ;;  %v5867_v39 = vld [vmem:[%s6131_s26 + $0x8] sm:$0xff]  }
 0x537   : > { %v5833_v15 = vpop.permute.xlu0 %5832  ;;  %v4810_v28 = vsel %vm3278_vm5, %v4808_v35, %v5829_v46  ;;  %v4811_v10 = vsel %vm3278_vm5, %v4809_v56, %v5830_v17 }
 0x538   : > { %v5835_v12 = vunpack.i.h.bf16 %v5833_v15  ;;  %v5834_v57 = vunpack.i.l.bf16 %v5833_v15 }
 0x53a   : > { %v4813_v9 = vsel %vm4812_vm6, %v4810_v28, %v5834_v57  ;;  %v4814_v44 = vsel %vm4812_vm6, %v4811_v10, %v5835_v12  ;;  %v4923_v12 = vsub.s32 4, %v6173_v18 }
 0x53c   : > { %v4924_v57 = vrot.slane %v7145_v13, %v4923_v12 }
 0x573   : > { %v5843_v45 = vpop.permute.xlu0 %5842  ;;  %v5838_v4 = vpop.permute.xlu1 %5837 }
 0x574   : > { %v5840_v59 = vunpack.i.h.bf16 %v5838_v4  ;;  %v5839_v29 = vunpack.i.l.bf16 %v5838_v4  ;;  %v5845_v50 = vunpack.i.h.bf16 %v5843_v45  ;;  %v5844_v37 = vunpack.i.l.bf16 %v5843_v45 }
 0x575   : > { %v4929_v45 = vsub.s32 5, %v6173_v18 }
 0x576   : > { %v4817_v2 = vsel %vm4815_vm7, %v4814_v44, %v5840_v59  ;;  %v4816_v41 = vsel %vm4815_vm7, %v4813_v9, %v5839_v29 }
 0x577   : > { %v5853_v63 = vpop.permute.xlu0 %5852  ;;  %v5848_v23 = vpop.permute.xlu1 %5847  ;;  %v4819_v14 = vsel %vm4818_vm8, %v4816_v41, %v5844_v37  ;;  %v4820_v27 = vsel %vm4818_vm8, %v4817_v2, %v5845_v50  ;;  %v4930_v9 = vrot.slane %v7145_v13, %v4929_v45  ;;  %v5868_v41 = vld [vmem:[%s6131_s26 + $0x10] sm:$0xff]  }
 0x578   : > { %v5855_v58 = vunpack.i.h.bf16 %v5853_v63  ;;  %v5854_v1 = vunpack.i.l.bf16 %v5853_v63  ;;  %v5850_v6 = vunpack.i.h.bf16 %v5848_v23  ;;  %v5849_v20 = vunpack.i.l.bf16 %v5848_v23  ;;  %v5869_v63 = vld [vmem:[%s6131_s26 + $0x18] sm:$0xff]   ;;  %v5421_v23 = vld [vmem:[%s7240_s3] ss:$0 sm:$0xff] }
 0x57a   : > { %v4822_v16 = vsel %vm4821_vm9, %v4819_v14, %v5849_v20  ;;  %v4823_v7 = vsel %vm4821_vm9, %v4820_v27, %v5850_v6 }
 0x57b   : > { %v4825_v21 = vsel %vm4824_vm10, %v4822_v16, %v5854_v1  ;;  %v4826_v22 = vsel %vm4824_vm10, %v4823_v7, %v5855_v58 }
 0x57c   : > { %v4827_v11 = vpack.c.bf16 %v4826_v22, %v4825_v21  ;;  %v5014_v22 = vsub.s32 6, %v6173_v18 }
 0x57e   : > { %5748 = vmatmul.mubr.msk.bf16.vlgmr.msra.gmra.mrb[68].mxu1 %vm560_vm2, %v4827_v11 }
 0x57f   : > { %5767 = vmatprep.mubr.msk.bf16.mxu1 %vm6000_vm1, %v5999_v8  ;;  %5760 = vmatpush3.bf16.msra.mxu1 %v5866_v25  ;;  %v5116_v25 = vrot.slane %v7145_v13, %v5115_v48 }
 0x580   : > { %5761 = vmatprep.subr.bf16.mxu1 %v5999_v8 }
 0x583   : > { %5762 = vmatpush3.bf16.msra.mxu1 %v5867_v39 }
 0x584   : > { %5763 = vmatprep.subr.bf16.mxu1 %v5999_v8 }
 0x587   : > { %5764 = vmatpush3.bf16.msra.mxu1 %v5868_v41 }
 0x588   : > { %5765 = vmatprep.subr.bf16.mxu1 %v5999_v8  ;;  %v5015_v8 = vrot.slane %v7145_v13, %v5014_v22 }
 0x58b   : > { %5766 = vmatpush3.bf16.msra.mxu1 %v5869_v63 }
 0x651   : > { %v4885_v51 = vpop.f32.mrb[68].mxu1 }
 0x652   : > { %v4886_v30 = vadd.f32 %v4885_v51, %v4835_v33  ;;  %v5749_v19 = vpop.f32.mrb[69].mxu1 }
 0x653   : > { %v4888_v47 = vpop.f32.mrb[70].mxu1 }
 0x654   : > { %v4889_v31 = vadd.f32 %v4888_v47, %v4835_v33  ;;  %v5750_v38 = vpop.f32.mrb[71].mxu1  ;;  %v4892_v24 = vadd.f32 %v5943_v32, %v4886_v30 }
 0x656   : > { %v4894_v0 = vsel %vm560_vm2, %v4892_v24, 0.0  ;;  %v4893_v55 = vadd.f32 %v5944_v62, %v4889_v31 }
 0x657   : > { %4895 = vadd.xlane.f32.xlu1 %v4894_v0 }
 0x658   : > { %v4897_v40 = vsel %vm560_vm2, %v4893_v55, 0.0 }
 0x659   : > { %4898 = vadd.xlane.f32.xlu0 %v4897_v40 }
 0x6e4   : > { %v4896_v52 = vpop.xlane.xlu1 %4895 }
 0x6e5   : > { %v4901_v34 = vmul.f32 0.03125, %v4896_v52 }
 0x6e6   : > { %v4899_v42 = vpop.xlane.xlu0 %4898 }
 0x6e7   : > { %v4903_v53 = vsub.f32 %v4892_v24, %v4901_v34  ;;  %v4902_v5 = vmul.f32 0.03125, %v4899_v42 }
 0x6e9   : > { %v4904_v60 = vsub.f32 %v4893_v55, %v4902_v5  ;;  %v4905_v54 = vmul.f32 %v4903_v53, %v4903_v53 }
 0x6eb   : > { %v4907_v3 = vsel %vm560_vm2, %v4905_v54, 0.0  ;;  %v4906_v26 = vmul.f32 %v4904_v60, %v4904_v60 }
 0x6ec   : > { %4908 = vadd.xlane.f32.xlu0 %v4907_v3 }
 0x6ed   : > { %v4910_v36 = vsel %vm560_vm2, %v4906_v26, 0.0 }
 0x6ee   : > { %4911 = vadd.xlane.f32.xlu1 %v4910_v36 }
 0x779   : > { %v4909_v49 = vpop.xlane.xlu0 %4908 }
 0x77a   : > { %v4913_v15 = vmul.f32 0.03125, %v4909_v49 }
 0x77b   : > { %v4912_v17 = vpop.xlane.xlu1 %4911 }
 0x77c   : > { %v4915_v46 = vadd.f32 1e-05, %v4913_v15  ;;  %v4914_v35 = vmul.f32 0.03125, %v4912_v17  ;;  %v5430_v17 = vld [vmem:[%s6136_s30 + $0x8] ss:$0 sm:$0xff] }
 0x77e   : > { %5934 = vrsqrt.f32 %v4915_v46  ;;  %v4916_v56 = vadd.f32 1e-05, %v4914_v35 }
 0x780   : > { %5936 = vrsqrt.f32 %v4916_v56 }
 0x788   : > { %v5935_v4 = vpop.eup %5934 }
 0x789   : > { %v4919_v28 = vmul.f32 %v5935_v4, %v4903_v53 }
 0x78a   : > { %v5937_v10 = vpop.eup %5936 }
 0x78b   : > { %v4925_v59 = vmul.f32 %v4924_v57, %v4919_v28  ;;  %v4920_v29 = vmul.f32 %v5937_v10, %v4904_v60 }
 0x78d   : > { %v4926_v44 = vmul.f32 %v4924_v57, %v4920_v29  ;;  %v4931_v50 = vadd.f32 %v4930_v9, %v4925_v59 }
 0x78f   : > { %v4932_v37 = vadd.f32 %v4930_v9, %v4926_v44 }
 0x791   : > { %v4933_v2 = vpack.c.bf16 %v4932_v37, %v4931_v50 }
 0x793   : > { %5756 = vmatmul.mubr.msk.bf16.vlgmr.msra.gmra.mrb[72].mxu0 %vm560_vm2, %v4933_v2 }
 0x866   : > { %v4994_v58 = vpop.f32.mrb[72].mxu0 }
 0x867   : > { %v4995_v1 = vadd.f32 %v5421_v23, %v4994_v58  ;;  %v5757_v6 = vpop.f32.mrb[73].mxu0 }
 0x868   : > { %v4997_v20 = vpop.f32.mrb[74].mxu0 }
 0x869   : > { %v4998_v14 = vadd.f32 %v5421_v23, %v4997_v20  ;;  %v5758_v27 = vpop.f32.mrb[75].mxu0  ;;  %v5001_v16 = vmax.f32 %v4995_v1, 0.0 }
 0x86b   : > { %v5002_v7 = vmax.f32 %v4998_v14, 0.0 }
 0x86d   : > { %v5003_v21 = vpack.c.bf16 %v5002_v7, %v5001_v16 }
 0x86f   : > { %5768 = vmatmul.mubr.msk.bf16.vlgmr.msra.gmra.mrb[72].mxu1 %vm5040_vm11, %v5003_v21 }
 0x942   : > { %v5078_v11 = vpop.f32.mrb[72].mxu1 }
 0x943   : > { %v5079_v43 = vadd.f32 %v5078_v11, %v5015_v8  ;;  %v5769_v33 = vpop.f32.mrb[73].mxu1 }
 0x944   : > { %v5081_v51 = vpop.f32.mrb[74].mxu1 }
 0x945   : > { %v5082_v30 = vadd.f32 %v5081_v51, %v5015_v8  ;;  %v5770_v19 = vpop.f32.mrb[75].mxu1  ;;  %v5085_v47 = vadd.f32 %v5079_v43, %v4931_v50 }
 0x947   : > { %v5087_v31 = vsel %vm560_vm2, %v5085_v47, 0.0  ;;  %v5086_v38 = vadd.f32 %v5082_v30, %v4932_v37 }
 0x948   : > { %5088 = vadd.xlane.f32.xlu0 %v5087_v31 }
 0x949   : > { %v5090_v32 = vsel %vm560_vm2, %v5086_v38, 0.0 }
 0x94a   : > { %5091 = vadd.xlane.f32.xlu1 %v5090_v32 }
 0x9d5   : > { %v5089_v24 = vpop.xlane.xlu0 %5088 }
 0x9d6   : > { %v5093_v0 = vmul.f32 0.03125, %v5089_v24 }
 0x9d7   : > { %v5092_v62 = vpop.xlane.xlu1 %5091 }
 0x9d8   : > { %v5095_v55 = vsub.f32 %v5085_v47, %v5093_v0  ;;  %v5094_v40 = vmul.f32 0.03125, %v5092_v62 }
 0x9da   : > { %v5096_v52 = vsub.f32 %v5086_v38, %v5094_v40  ;;  %v5097_v34 = vmul.f32 %v5095_v55, %v5095_v55 }
 0x9dc   : > { %v5099_v42 = vsel %vm560_vm2, %v5097_v34, 0.0  ;;  %v5098_v53 = vmul.f32 %v5096_v52, %v5096_v52 }
 0x9dd   : > { %5100 = vadd.xlane.f32.xlu0 %v5099_v42 }
 0x9de   : > { %v5102_v5 = vsel %vm560_vm2, %v5098_v53, 0.0 }
 0x9df   : > { %5103 = vadd.xlane.f32.xlu1 %v5102_v5 }
 0xa6a   : > { %v5101_v60 = vpop.xlane.xlu0 %5100 }
 0xa6b   : > { %v5105_v54 = vmul.f32 0.03125, %v5101_v60 }
 0xa6c   : > { %v5104_v3 = vpop.xlane.xlu1 %5103 }
 0xa6d   : > { %v5107_v26 = vadd.f32 1e-05, %v5105_v54  ;;  %v5106_v36 = vmul.f32 0.03125, %v5104_v3 }
 0xa6f   : > { %5938 = vrsqrt.f32 %v5107_v26  ;;  %v5108_v61 = vadd.f32 1e-05, %v5106_v36 }
 0xa71   : > { %5940 = vrsqrt.f32 %v5108_v61 }
 0xa79   : > { %v5939_v39 = vpop.eup %5938 }
 0xa7a   : > { %v5111_v49 = vmul.f32 %v5939_v39, %v5095_v55 }
 0xa7b   : > { %v5941_v15 = vpop.eup %5940 }
 0xa7c   : > { %v5117_v46 = vmul.f32 %v5116_v25, %v5111_v49  ;;  %v5112_v35 = vmul.f32 %v5941_v15, %v5096_v52  ;;  %5130 = sbr.rel (%p5431_p6) target bundleno = 2699 (0xa8b), region = 68 }
 0xa7e   : > { %v5123_v56 = vadd.f32 %v5430_v17, %v5117_v46  ;;  %v5118_v12 = vmul.f32 %v5116_v25, %v5112_v35 }
 0xa80   : > { %5125 = vst.msk [vmem:[#allocation2] sm:$0xff] %vm560_vm2, %v5123_v56  ;;  %v5124_v57 = vadd.f32 %v5430_v17, %v5118_v12 }
 0xa82   : > { %5126 = vst.msk [vmem:[#allocation2 + $0x8] sm:$0xff] %vm560_vm2, %v5124_v57 }
 0xa87   : > { %v5131_v45 = vld [vmem:[#allocation2] sm:$0xff] }
 0xa88   : > { %5133 = vst.msk [vmem:[#allocation3] sm:$0xff] %vm560_vm2, %v5131_v45 }
 0xa89   : > { %v5132_v18 = vld [vmem:[#allocation2 + $0x8] sm:$0xff] }
 0xa8a   : > { %5134 = vst.msk [vmem:[#allocation3 + $0x8] sm:$0xff] %vm560_vm2, %v5132_v18 }
 0xa8b PF: > { %s7241_s18 = sadd.s32 4294967295, %s5997_s15   ;;  %s6017_s30 = smov [#allocation3]  }
 0xa8c   : > { %p7188_p7 = scmp.eq.s32.totalorder %s7241_s18, 1  ;;  %s5144_s19 = sshll.u32 %s6017_s30, 4  ;;  %s5145_s19 = int_to_ptr.vmem [resolvable:$true] %s5144_s19 }
 0xa8d   : > { %s5945_s22 = scalar_lea.vmem %s5145_s19, 256  ;;  %p5952_p11 = scmp.lt.s32.totalorder %s5145_s19, %s5145_s19 }
 0xa8e   : > { %p5946_p8 = scmp.ne.s32.totalorder %s5145_s19, %s5945_s22  ;;  %p5953_p12 = scmp.lt.s32.totalorder %s5945_s22, %s5945_s22 }
 0xa90   : > { %p5947_p9 = pnand %p5946_p8, %p7188_p7  ;;  %p5954_p13 = por %p5953_p12, %p5952_p11 }
 0xa92   : > { %p5948_p10 = pneg %p5947_p9 }
 0xa94   : > { %p5955_p0 = pnand %p5954_p13, %p5948_p10 }
 0xa96   : > { %5958 = shalt.err (!%p5955_p0)
}
 0xa97   : > { %s5959_s28 = scalar_lea.hbm %s7234_s10, 256 }
 0xa98   : > { %p5960_p1 = scmp.ne.s32.totalorder %s7234_s10, %s5959_s28  ;;  %p5965_p4 = scmp.lt.u32.totalorder %s5959_s28, %s7234_s10 }
 0xa9a   : > { %p5961_p2 = pnand %p5960_p1, %p7188_p7 }
 0xa9c   : > { %p5962_p3 = pneg %p5961_p2 }
 0xa9e   : > { %p5967_p5 = pnand %p5965_p4, %p5962_p3 }
 0xaa0   : > { %5970 = shalt.err (!%p5967_p5)
}
 0xaa1   : > { %s6018_s17 = smov 128  }
 0xaa2   : > { %5772 = dma.vmem_to_hbm [thread:$0]  (%p7188_p7), %s5145_s19, 256, %s7234_s10, [#allocation4], %s6018_s17, %s6018_s17, %s6010_s27  }
 0xaa3   : > { %5984 = dma.done.wait (%p7188_p7), [#allocation4], 256  }
 0xaa4   : > { %5986 = vsyncadd (%p7188_p7), [#allocation4], 4294967040 }
 0xaa5 PF: > { %s21_s15 = sadd.s32 1, %s5997_s15   ;;  %s7243_s21 = sld [smem:[#allocation6_spill]] }
 0xaa6   : > { %p18_p6 = scmp.ge.s32.totalorder %s21_s15, 4   ;;  %s7244_s13 = smov %s5993_s14 }
 0xaa8   :  { %20 = sbr.rel (!%p18_p6) target bundleno = 5 (0x5), region = 120 }
 0xaab   : > { %s7245_s14 = smov %s7243_s21 }
 0xaaf   :  { %5160 = vsyncpa [#allocation4], 1 }
 0xab0   :  { %5162 = vsyncpa [#allocation4 + $0x1], 1 }

</bundles_post_ra>
